<compile_context>
chip_gen: v7x
topology: tpu7x:2x2x1
jax: 0.10.0
libtpu: 0.0.40
codegen_flags: <defaults>
</compile_context>

<pallas_src>
import numpy as np
import jax
import jax.numpy as jnp
from jax import lax
from jax.experimental import pallas as pl
from jax.experimental.pallas import tpu as pltpu

# Problem sizes (small 5-D Conv3d input; H*W = 128 keeps the last axis lane-aligned).
# gate_channels = 16, reduction_ratio = 4  -> channel-MLP hidden width CR = 4.
N, C, D, H, W = 2, 16, 8, 8, 16
CR = 4
K = 7                        # SpatialGate kernel size
P = (K - 1) // 2
HW = H * W                   # 128
DHW = D * HW                 # 1024
NEG_SLOPE = 0.01             # nn.LeakyReLU default
EPS = 1e-5                   # GroupNorm eps
PROWS = 48                   # packed MLP parameter block rows (3 aligned 16-row regions)


def _sigmoid(v):
    # sigmoid via EUP exp + approximate reciprocal (keeps the divide off the VPU)
    return pl.reciprocal(1.0 + jnp.exp(-v), approx=True)


def _leaky(v):
    return jnp.where(v >= 0, v, NEG_SLOPE * v)


def cbam_kernel(scalars_ref, params_ref, x_ref, band_hbm, out_ref, band_vmem, band_sem):
    # scalars_ref (SMEM, (3,)): [conv_bias, gn_gamma, gn_beta]
    # params_ref  (PROWS, C) f32: packed channel-MLP params (see pack_mlp_params)
    # x_ref       (N, C, D, HW) f32 lane-dense activations
    # band_hbm    (K, 2*HW, HW) bf16 in HBM (manual DMA)
    # out_ref     (N, C, D, HW) f32
    # band_vmem   VMEM scratch, band_sem DMA semaphore

    # 1) kick off the band DMA so it overlaps all of the ChannelGate / pooling work
    band_cp = pltpu.make_async_copy(band_hbm, band_vmem, band_sem)
    band_cp.start()

    # read SMEM scalars before any DMA wait
    conv_b = scalars_ref[0]
    gn_g = scalars_ref[1]
    gn_b = scalars_ref[2]

    # packed MLP params: zero-padded square blocks / aligned bias columns (no relayout)
    w1p = params_ref[0:16, :]           # (16, 16): rows >= CR are zero
    w2p = params_ref[16:32, :]          # (16, 16): lanes >= CR are zero
    b1c = params_ref[32:48, 0:1]        # (16, 1):  rows >= CR are zero
    b2c = params_ref[32:48, 1:2]        # (16, 1)

    # 2) ChannelGate pools for all batches -> ONE batched two-layer MLP
    avg_cols, max_cols = [], []
    for n in range(N):
        x_n = x_ref[n]                                            # (C, D, HW)
        s_d = jnp.sum(x_n, axis=2)                                # (C, D)  lane reduce
        avg_cols.append(jnp.sum(s_d, axis=1, keepdims=True) * (1.0 / DHW))   # (C, 1)
        m_d = jnp.max(x_n, axis=2)                                # (C, D)
        max_cols.append(jnp.max(m_d, axis=1, keepdims=True))      # (C, 1)
    pmat = jnp.concatenate(avg_cols + max_cols, axis=1)           # (C, 2N)

    h = jnp.dot(w1p, pmat, preferred_element_type=jnp.float32) + b1c     # (C, 2N)
    h = _leaky(h)                                                 # padded rows stay 0
    att = jnp.dot(w2p, h, preferred_element_type=jnp.float32) + b2c      # (C, 2N)
    att = att[:, 0:N] + att[:, N:2 * N]                           # avg + max branches
    s_ch = _sigmoid(att)                                          # (C, N) channel scales

    # 3) channel gate + ChannelPool, kept sublane-major (D, HW); gated x stashed in out_ref
    zpad = jnp.zeros((P, 2 * HW), jnp.float32)
    pool_pads = []                                                # per batch: (D+2P, 2*HW)
    for n in range(N):
        x1_n = x_ref[n] * s_ch[:, n:n + 1][:, :, None]            # (C, D, HW)
        out_ref[n] = x1_n                                         # spatial gate applied later
        p_max = jnp.max(x1_n, axis=0)                             # (D, HW)
        p_mean = jnp.sum(x1_n, axis=0) * (1.0 / C)                # (D, HW)
        p_cat = jnp.concatenate([p_max, p_mean], axis=1)          # (D, 2*HW) lane concat
        pool_pads.append(jnp.concatenate([zpad, p_cat, zpad], axis=0))   # depth zero-pad

    # 4) Conv3d(2->1, k=7, pad=3): K accumulated bf16 MXU matmuls over sublane windows
    band_cp.wait()
    acc = jnp.zeros((N * D, HW), jnp.float32)
    for kd in range(K):
        lhs = jnp.concatenate([pp[kd:kd + D, :] for pp in pool_pads], axis=0)  # (N*D, 2*HW)
        acc = acc + jnp.dot(lhs.astype(jnp.bfloat16), band_vmem[kd],
                            preferred_element_type=jnp.float32)
    conv = acc + conv_b                                           # (N*D, HW)

    # 5) GroupNorm(1,1) (biased var) + LeakyReLU + sigmoid, then spatial gate in place
    for n in range(N):
        y = conv[n * D:(n + 1) * D, :]                            # (D, HW) aligned slice
        mu = jnp.mean(y)
        var = jnp.mean((y - mu) ** 2)
        y = (y - mu) * lax.rsqrt(var + EPS) * gn_g + gn_b
        y = _leaky(y)
        sp = _sigmoid(y)                                          # (D, HW)
        out_ref[n] = out_ref[n] * sp[None, :, :]                  # x * ch_gate * sp_gate


def build_band_matrix(conv_w):
    """Re-layout the Conv3d weight (1, 2, K, K, K) into (K, 2*HW, HW) band slices so that
    conv[n*D+d, :] = sum_kd [max_pad[n, d+kd, :] ; mean_pad[n, d+kd, :]] @ band[kd], with
    spatial zero padding baked in (out-of-range spatial taps are simply absent)."""
    w = np.asarray(conv_w, np.float32)
    band = np.zeros((K, 2, HW, HW), np.float32)
    ho, wo = np.meshgrid(np.arange(H), np.arange(W), indexing="ij")
    cols = (ho * W + wo).ravel()
    for kd in range(K):
        for c in range(2):                       # c=0: max channel, c=1: mean channel
            for kh in range(K):
                for kw in range(K):
                    hi = (ho + kh - P).ravel()
                    wi = (wo + kw - P).ravel()
                    valid = (hi >= 0) & (hi < H) & (wi >= 0) & (wi < W)
                    rows = hi * W + wi
                    band[kd, c, rows[valid], cols[valid]] = w[0, c, kd, kh, kw]
    return jnp.asarray(band.reshape(K, 2 * HW, HW), jnp.bfloat16)


def pack_mlp_params(w1, b1, w2, b2):
    """One small VMEM block: rows 0..15 = w1 (zero-padded to 16x16), rows 16..31 = w2
    (zero-padded lanes), rows 32..47 = bias columns [b1 | b2].  Zero padding is benign:
    padded MLP rows stay 0 through LeakyReLU and are multiplied by zero w2 lanes."""
    p = jnp.zeros((PROWS, C), jnp.float32)
    p = p.at[0:CR, :].set(w1.astype(jnp.float32))
    p = p.at[16:16 + C, 0:CR].set(w2.astype(jnp.float32))
    p = p.at[32:32 + CR, 0].set(b1.astype(jnp.float32))
    p = p.at[32:32 + C, 1].set(b2.astype(jnp.float32))
    return p


def cbam_forward(x, w1, b1, w2, b2, conv_w, conv_b, gn_w, gn_b):
    x4 = x.reshape(N, C, D, HW)                                   # lane-dense view, no copy
    band = build_band_matrix(conv_w)                              # (K, 2*HW, HW) bf16
    scalars = jnp.stack([conv_b[0], gn_w[0], gn_b[0]]).astype(jnp.float32)
    params = pack_mlp_params(w1, b1, w2, b2)

    out4 = pl.pallas_call(
        cbam_kernel,
        out_shape=jax.ShapeDtypeStruct((N, C, D, HW), jnp.float32),
        grid_spec=pltpu.PrefetchScalarGridSpec(
            num_scalar_prefetch=0,
            grid=(1,),                                            # single step: batches fused
            in_specs=[
                pl.BlockSpec(memory_space=pltpu.MemorySpace.SMEM),        # [conv_b, gn_g, gn_b]
                pl.BlockSpec((PROWS, C), lambda i: (0, 0)),               # packed MLP params
                pl.BlockSpec((N, C, D, HW), lambda i: (0, 0, 0, 0)),      # x (lane-dense)
                pl.BlockSpec(memory_space=pl.ANY),                        # conv band: manual DMA
            ],
            out_specs=pl.BlockSpec((N, C, D, HW), lambda i: (0, 0, 0, 0)),
            scratch_shapes=[
                pltpu.VMEM((K, 2 * HW, HW), jnp.bfloat16),                # band landing buffer
                pltpu.SemaphoreType.DMA(()),
            ],
        ),
        compiler_params=pltpu.CompilerParams(
            dimension_semantics=("arbitrary",)),
    )(scalars, params, x4, band)
    return out4.reshape(N, C, D, H, W)


def cbam_reference(x, w1, b1, w2, b2, conv_w, conv_b, gn_w, gn_b):
    # Pure-JAX reference matching the PyTorch CBAM forward.
    avg = jnp.mean(x, axis=(2, 3, 4))                             # (N, C)
    mx = jnp.max(x, axis=(2, 3, 4))                               # (N, C)

    def mlp(v):
        h = v @ w1.T + b1
        h = jnp.where(h >= 0, h, NEG_SLOPE * h)
        return h @ w2.T + b2

    att = mlp(avg) + mlp(mx)
    x1 = x * jax.nn.sigmoid(att)[:, :, None, None, None]

    pooled = jnp.concatenate([jnp.max(x1, axis=1, keepdims=True),
                              jnp.mean(x1, axis=1, keepdims=True)], axis=1)
    y = lax.conv_general_dilated(pooled, conv_w, window_strides=(1, 1, 1),
                                 padding=[(P, P)] * 3,
                                 dimension_numbers=("NCDHW", "OIDHW", "NCDHW"))
    y = y + conv_b.reshape(1, -1, 1, 1, 1)
    mu = jnp.mean(y, axis=(1, 2, 3, 4), keepdims=True)
    var = jnp.mean((y - mu) ** 2, axis=(1, 2, 3, 4), keepdims=True)
    y = (y - mu) / jnp.sqrt(var + EPS)
    y = y * gn_w.reshape(1, -1, 1, 1, 1) + gn_b.reshape(1, -1, 1, 1, 1)
    y = jnp.where(y >= 0, y, NEG_SLOPE * y)
    return x1 * jax.nn.sigmoid(y)


if __name__ == "__main__":
    key = jax.random.PRNGKey(0)
    kx, k1, k2, k3, k4, kw, kb = jax.random.split(key, 7)
    x = jax.random.normal(kx, (N, C, D, H, W), jnp.float32)
    # Channel-gate MLP params (PyTorch-default-style uniform bounds)
    w1 = jax.random.uniform(k1, (CR, C), jnp.float32, -0.25, 0.25)
    b1 = jax.random.uniform(k2, (CR,), jnp.float32, -0.25, 0.25)
    w2 = jax.random.uniform(k3, (C, CR), jnp.float32, -0.5, 0.5)
    b2 = jax.random.uniform(k4, (C,), jnp.float32, -0.5, 0.5)
    # SpatialGate: Conv3d(2, 1, 7, padding=3) + GroupNorm(1, 1) with default affine init
    conv_w = jax.random.uniform(kw, (1, 2, K, K, K), jnp.float32, -0.06, 0.06)
    conv_b = jax.random.uniform(kb, (1,), jnp.float32, -0.06, 0.06)
    gn_w = jnp.ones((1,), jnp.float32)
    gn_b = jnp.zeros((1,), jnp.float32)

    out = jax.block_until_ready(cbam_forward(x, w1, b1, w2, b2, conv_w, conv_b, gn_w, gn_b))
    ref = jax.block_until_ready(cbam_reference(x, w1, b1, w2, b2, conv_w, conv_b, gn_w, gn_b))
    err = float(jnp.max(jnp.abs(out - ref)))
    assert out.shape == (N, C, D, H, W)
    assert err < 2e-2, f"max abs err too large: {err}"   # bf16 conv path
    print("KERNEL_OK")
</pallas_src>

<mosaic_0001>
module attributes {stable_mosaic.version = 11 : i64} {
  func.func @cbam_kernel(%arg0: i32, %arg1: memref<3xf32, #tpu.memory_space<smem>>, %arg2: memref<48x16xf32, #tpu.memory_space<vmem>>, %arg3: memref<2x16x8x128xf32, #tpu.memory_space<vmem>>, %arg4: memref<7x256x128xbf16, #tpu.memory_space<any>>, %arg5: memref<2x16x8x128xf32, #tpu.memory_space<vmem>>, %arg6: memref<7x256x128xbf16, #tpu.memory_space<vmem>>, %arg7: memref<!tpu.dma_semaphore, #tpu.memory_space<semaphore_mem>>) attributes {dimension_semantics = [#tpu.dimension_semantics<arbitrary>], iteration_bounds = array<i64: 1>, scalar_prefetch = 0 : i64, scratch_operands = 2 : i64, tpu.core_type = #tpu.core_type<tc>, window_params = [{transform_indices = @transform_0, window_bounds = array<i64: 3>}, {pipeline_mode = #tpu.pipeline_mode<synchronous>, transform_indices = @transform_1, window_bounds = array<i64: 48, 16>}, {pipeline_mode = #tpu.pipeline_mode<synchronous>, transform_indices = @transform_2, window_bounds = array<i64: 2, 16, 8, 128>}, {}, {pipeline_mode = #tpu.pipeline_mode<synchronous>, transform_indices = @transform_4, window_bounds = array<i64: 2, 16, 8, 128>}]} {
    tpu.enqueue_dma source(%arg4 : memref<7x256x128xbf16, #tpu.memory_space<any>>) target(%arg6 : memref<7x256x128xbf16, #tpu.memory_space<vmem>>) target_semaphore(%arg7 : memref<!tpu.dma_semaphore, #tpu.memory_space<semaphore_mem>>)
    %c0 = arith.constant 0 : index
    %0 = memref.load %arg1[%c0] : memref<3xf32, #tpu.memory_space<smem>>
    %c1 = arith.constant 1 : index
    %1 = memref.load %arg1[%c1] : memref<3xf32, #tpu.memory_space<smem>>
    %c2 = arith.constant 2 : index
    %2 = memref.load %arg1[%c2] : memref<3xf32, #tpu.memory_space<smem>>
    %c0_0 = arith.constant 0 : index
    %c0_1 = arith.constant 0 : index
    %3 = vector.load %arg2[%c0_0, %c0_1] : memref<48x16xf32, #tpu.memory_space<vmem>>, vector<16x16xf32>
    %c16 = arith.constant 16 : index
    %c0_2 = arith.constant 0 : index
    %4 = vector.load %arg2[%c16, %c0_2] : memref<48x16xf32, #tpu.memory_space<vmem>>, vector<16x16xf32>
    %c32 = arith.constant 32 : index
    %c0_3 = arith.constant 0 : index
    %5 = vector.load %arg2[%c32, %c0_3] : memref<48x16xf32, #tpu.memory_space<vmem>>, vector<16x1xf32>
    %c32_4 = arith.constant 32 : index
    %c1_5 = arith.constant 1 : index
    %6 = vector.load %arg2[%c32_4, %c1_5] : memref<48x16xf32, #tpu.memory_space<vmem>>, vector<16x1xf32>
    %c0_6 = arith.constant 0 : index
    %c0_7 = arith.constant 0 : index
    %c0_8 = arith.constant 0 : index
    %c0_9 = arith.constant 0 : index
    %7 = vector.load %arg3[%c0_6, %c0_7, %c0_8, %c0_9] : memref<2x16x8x128xf32, #tpu.memory_space<vmem>>, vector<1x16x8x128xf32>
    %8 = vector.shape_cast %7 : vector<1x16x8x128xf32> to vector<16x8x128xf32>
    %cst = arith.constant dense<0.000000e+00> : vector<16x8xf32>
    %9 = vector.multi_reduction <add>, %8, %cst [2] : vector<16x8x128xf32> to vector<16x8xf32>
    %cst_10 = arith.constant dense<0.000000e+00> : vector<16xf32>
    %10 = vector.multi_reduction <add>, %9, %cst_10 [1] : vector<16x8xf32> to vector<16xf32>
    %11 = vector.shape_cast %10 : vector<16xf32> to vector<16x1xf32>
    %cst_11 = arith.constant 9.765625E-4 : f32
    %12 = vector.broadcast %cst_11 : f32 to vector<16x1xf32>
    %13 = arith.mulf %11, %12 : vector<16x1xf32>
    %cst_12 = arith.constant dense<0xFF800000> : vector<16x8xf32>
    %14 = vector.multi_reduction <maximumf>, %8, %cst_12 [2] : vector<16x8x128xf32> to vector<16x8xf32>
    %cst_13 = arith.constant dense<0xFF800000> : vector<16xf32>
    %15 = vector.multi_reduction <maximumf>, %14, %cst_13 [1] : vector<16x8xf32> to vector<16xf32>
    %16 = vector.shape_cast %15 : vector<16xf32> to vector<16x1xf32>
    %c1_14 = arith.constant 1 : index
    %c0_15 = arith.constant 0 : index
    %c0_16 = arith.constant 0 : index
    %c0_17 = arith.constant 0 : index
    %17 = vector.load %arg3[%c1_14, %c0_15, %c0_16, %c0_17] : memref<2x16x8x128xf32, #tpu.memory_space<vmem>>, vector<1x16x8x128xf32>
    %18 = vector.shape_cast %17 : vector<1x16x8x128xf32> to vector<16x8x128xf32>
    %cst_18 = arith.constant dense<0.000000e+00> : vector<16x8xf32>
    %19 = vector.multi_reduction <add>, %18, %cst_18 [2] : vector<16x8x128xf32> to vector<16x8xf32>
    %cst_19 = arith.constant dense<0.000000e+00> : vector<16xf32>
    %20 = vector.multi_reduction <add>, %19, %cst_19 [1] : vector<16x8xf32> to vector<16xf32>
    %21 = vector.shape_cast %20 : vector<16xf32> to vector<16x1xf32>
    %cst_20 = arith.constant 9.765625E-4 : f32
    %22 = vector.broadcast %cst_20 : f32 to vector<16x1xf32>
    %23 = arith.mulf %21, %22 : vector<16x1xf32>
    %cst_21 = arith.constant dense<0xFF800000> : vector<16x8xf32>
    %24 = vector.multi_reduction <maximumf>, %18, %cst_21 [2] : vector<16x8x128xf32> to vector<16x8xf32>
    %cst_22 = arith.constant dense<0xFF800000> : vector<16xf32>
    %25 = vector.multi_reduction <maximumf>, %24, %cst_22 [1] : vector<16x8xf32> to vector<16xf32>
    %26 = vector.shape_cast %25 : vector<16xf32> to vector<16x1xf32>
    %27 = tpu.concatenate %13, %23, %16, %26 in 1 : vector<16x1xf32>, vector<16x1xf32>, vector<16x1xf32>, vector<16x1xf32> -> vector<16x4xf32>
    %cst_23 = arith.constant dense<0.000000e+00> : vector<16x4xf32>
    %28 = tpu.matmul %3, %27, %cst_23 {dimension_numbers = #tpu.dot_dimension_numbers<[1], [0], [0], [1], [0, 0, 1, 1], [], []>} : vector<16x16xf32>, vector<16x4xf32>, vector<16x4xf32> -> vector<16x4xf32>
    %29 = vector.broadcast %5 : vector<16x1xf32> to vector<16x4xf32>
    %30 = arith.addf %28, %29 : vector<16x4xf32>
    %cst_24 = arith.constant 0.000000e+00 : f32
    %31 = vector.broadcast %cst_24 : f32 to vector<16x4xf32>
    %32 = arith.cmpf oge, %30, %31 : vector<16x4xf32>
    %cst_25 = arith.constant 0.00999999977 : f32
    %33 = vector.broadcast %cst_25 : f32 to vector<16x4xf32>
    %34 = arith.mulf %33, %30 : vector<16x4xf32>
    %35 = arith.select %32, %30, %34 : vector<16x4xi1>, vector<16x4xf32>
    %cst_26 = arith.constant dense<0.000000e+00> : vector<16x4xf32>
    %36 = tpu.matmul %4, %35, %cst_26 {dimension_numbers = #tpu.dot_dimension_numbers<[1], [0], [0], [1], [0, 0, 1, 1], [], []>} : vector<16x16xf32>, vector<16x4xf32>, vector<16x4xf32> -> vector<16x4xf32>
    %37 = vector.broadcast %6 : vector<16x1xf32> to vector<16x4xf32>
    %38 = arith.addf %36, %37 : vector<16x4xf32>
    %39 = vector.extract_strided_slice %38 {offsets = [0, 0], sizes = [16, 2], strides = [1, 1]} : vector<16x4xf32> to vector<16x2xf32>
    %40 = vector.extract_strided_slice %38 {offsets = [0, 2], sizes = [16, 2], strides = [1, 1]} : vector<16x4xf32> to vector<16x2xf32>
    %41 = arith.addf %39, %40 : vector<16x2xf32>
    %cst_27 = arith.constant 0.000000e+00 : f32
    %42 = vector.broadcast %cst_27 : f32 to vector<16x2xf32>
    %43 = arith.subf %42, %41 : vector<16x2xf32>
    %44 = math.exp %43 : vector<16x2xf32>
    %cst_28 = arith.constant 1.000000e+00 : f32
    %45 = vector.broadcast %cst_28 : f32 to vector<16x2xf32>
    %46 = arith.addf %45, %44 : vector<16x2xf32>
    %47 = tpu.reciprocal %46 {approx = true} : vector<16x2xf32> -> vector<16x2xf32>
    %cst_29 = arith.constant 0.000000e+00 : f32
    %48 = vector.broadcast %cst_29 : f32 to vector<3x256xf32>
    %c0_30 = arith.constant 0 : index
    %c0_31 = arith.constant 0 : index
    %c0_32 = arith.constant 0 : index
    %c0_33 = arith.constant 0 : index
    %49 = vector.load %arg3[%c0_30, %c0_31, %c0_32, %c0_33] : memref<2x16x8x128xf32, #tpu.memory_space<vmem>>, vector<1x16x8x128xf32>
    %50 = vector.shape_cast %49 : vector<1x16x8x128xf32> to vector<16x8x128xf32>
    %51 = vector.extract_strided_slice %47 {offsets = [0, 0], sizes = [16, 1], strides = [1, 1]} : vector<16x2xf32> to vector<16x1xf32>
    %52 = vector.shape_cast %51 : vector<16x1xf32> to vector<16x1x1xf32>
    %53 = vector.broadcast %52 : vector<16x1x1xf32> to vector<16x8x128xf32>
    %54 = arith.mulf %50, %53 : vector<16x8x128xf32>
    %c0_34 = arith.constant 0 : index
    %c0_35 = arith.constant 0 : index
    %c0_36 = arith.constant 0 : index
    %c0_37 = arith.constant 0 : index
    %55 = vector.load %arg5[%c0_34, %c0_35, %c0_36, %c0_37] : memref<2x16x8x128xf32, #tpu.memory_space<vmem>>, vector<1x16x8x128xf32>
    %56 = vector.shape_cast %55 : vector<1x16x8x128xf32> to vector<16x8x128xf32>
    %57 = vector.shape_cast %54 : vector<16x8x128xf32> to vector<1x16x8x128xf32>
    tpu.vector_store %arg5[%c0_34, %c0_35, %c0_36, %c0_37], %57 {strides = array<i32>} : memref<2x16x8x128xf32, #tpu.memory_space<vmem>>, vector<1x16x8x128xf32>,
    %cst_38 = arith.constant dense<0xFF800000> : vector<8x128xf32>
    %58 = vector.multi_reduction <maximumf>, %54, %cst_38 [0] : vector<16x8x128xf32> to vector<8x128xf32>
    %cst_39 = arith.constant dense<0.000000e+00> : vector<8x128xf32>
    %59 = vector.multi_reduction <add>, %54, %cst_39 [0] : vector<16x8x128xf32> to vector<8x128xf32>
    %cst_40 = arith.constant 6.250000e-02 : f32
    %60 = vector.broadcast %cst_40 : f32 to vector<8x128xf32>
    %61 = arith.mulf %59, %60 : vector<8x128xf32>
    %62 = tpu.concatenate %58, %61 in 1 : vector<8x128xf32>, vector<8x128xf32> -> vector<8x256xf32>
    %63 = tpu.concatenate %48, %62, %48 in 0 : vector<3x256xf32>, vector<8x256xf32>, vector<3x256xf32> -> vector<14x256xf32>
    %c1_41 = arith.constant 1 : index
    %c0_42 = arith.constant 0 : index
    %c0_43 = arith.constant 0 : index
    %c0_44 = arith.constant 0 : index
    %64 = vector.load %arg3[%c1_41, %c0_42, %c0_43, %c0_44] : memref<2x16x8x128xf32, #tpu.memory_space<vmem>>, vector<1x16x8x128xf32>
    %65 = vector.shape_cast %64 : vector<1x16x8x128xf32> to vector<16x8x128xf32>
    %66 = vector.extract_strided_slice %47 {offsets = [0, 1], sizes = [16, 1], strides = [1, 1]} : vector<16x2xf32> to vector<16x1xf32>
    %67 = vector.shape_cast %66 : vector<16x1xf32> to vector<16x1x1xf32>
    %68 = vector.broadcast %67 : vector<16x1x1xf32> to vector<16x8x128xf32>
    %69 = arith.mulf %65, %68 : vector<16x8x128xf32>
    %c1_45 = arith.constant 1 : index
    %c0_46 = arith.constant 0 : index
    %c0_47 = arith.constant 0 : index
    %c0_48 = arith.constant 0 : index
    %70 = vector.load %arg5[%c1_45, %c0_46, %c0_47, %c0_48] : memref<2x16x8x128xf32, #tpu.memory_space<vmem>>, vector<1x16x8x128xf32>
    %71 = vector.shape_cast %70 : vector<1x16x8x128xf32> to vector<16x8x128xf32>
    %72 = vector.shape_cast %69 : vector<16x8x128xf32> to vector<1x16x8x128xf32>
    tpu.vector_store %arg5[%c1_45, %c0_46, %c0_47, %c0_48], %72 {strides = array<i32>} : memref<2x16x8x128xf32, #tpu.memory_space<vmem>>, vector<1x16x8x128xf32>,
    %cst_49 = arith.constant dense<0xFF800000> : vector<8x128xf32>
    %73 = vector.multi_reduction <maximumf>, %69, %cst_49 [0] : vector<16x8x128xf32> to vector<8x128xf32>
    %cst_50 = arith.constant dense<0.000000e+00> : vector<8x128xf32>
    %74 = vector.multi_reduction <add>, %69, %cst_50 [0] : vector<16x8x128xf32> to vector<8x128xf32>
    %cst_51 = arith.constant 6.250000e-02 : f32
    %75 = vector.broadcast %cst_51 : f32 to vector<8x128xf32>
    %76 = arith.mulf %74, %75 : vector<8x128xf32>
    %77 = tpu.concatenate %73, %76 in 1 : vector<8x128xf32>, vector<8x128xf32> -> vector<8x256xf32>
    %78 = tpu.concatenate %48, %77, %48 in 0 : vector<3x256xf32>, vector<8x256xf32>, vector<3x256xf32> -> vector<14x256xf32>
    tpu.wait_dma2 semaphore(%arg7 : memref<!tpu.dma_semaphore, #tpu.memory_space<semaphore_mem>>) src(%arg4 : memref<7x256x128xbf16, #tpu.memory_space<any>>) dst(%arg6 : memref<7x256x128xbf16, #tpu.memory_space<vmem>>)
    %cst_52 = arith.constant 0.000000e+00 : f32
    %79 = vector.broadcast %cst_52 : f32 to vector<16x128xf32>
    %80 = vector.extract_strided_slice %63 {offsets = [0, 0], sizes = [8, 256], strides = [1, 1]} : vector<14x256xf32> to vector<8x256xf32>
    %81 = vector.extract_strided_slice %78 {offsets = [0, 0], sizes = [8, 256], strides = [1, 1]} : vector<14x256xf32> to vector<8x256xf32>
    %82 = tpu.concatenate %80, %81 in 0 : vector<8x256xf32>, vector<8x256xf32> -> vector<16x256xf32>
    %83 = arith.truncf %82 : vector<16x256xf32> to vector<16x256xbf16>
    %c0_53 = arith.constant 0 : index
    %c0_54 = arith.constant 0 : index
    %c0_55 = arith.constant 0 : index
    %84 = vector.load %arg6[%c0_53, %c0_54, %c0_55] : memref<7x256x128xbf16, #tpu.memory_space<vmem>>, vector<1x256x128xbf16>
    %85 = vector.shape_cast %84 : vector<1x256x128xbf16> to vector<256x128xbf16>
    %cst_56 = arith.constant dense<0.000000e+00> : vector<16x128xf32>
    %86 = tpu.matmul %83, %85, %cst_56 {dimension_numbers = #tpu.dot_dimension_numbers<[1], [0], [0], [1], [0, 0, 1, 1], [], []>} : vector<16x256xbf16>, vector<256x128xbf16>, vector<16x128xf32> -> vector<16x128xf32>
    %87 = arith.addf %79, %86 : vector<16x128xf32>
    %88 = vector.extract_strided_slice %63 {offsets = [1, 0], sizes = [8, 256], strides = [1, 1]} : vector<14x256xf32> to vector<8x256xf32>
    %89 = vector.extract_strided_slice %78 {offsets = [1, 0], sizes = [8, 256], strides = [1, 1]} : vector<14x256xf32> to vector<8x256xf32>
    %90 = tpu.concatenate %88, %89 in 0 : vector<8x256xf32>, vector<8x256xf32> -> vector<16x256xf32>
    %91 = arith.truncf %90 : vector<16x256xf32> to vector<16x256xbf16>
    %c1_57 = arith.constant 1 : index
    %c0_58 = arith.constant 0 : index
    %c0_59 = arith.constant 0 : index
    %92 = vector.load %arg6[%c1_57, %c0_58, %c0_59] : memref<7x256x128xbf16, #tpu.memory_space<vmem>>, vector<1x256x128xbf16>
    %93 = vector.shape_cast %92 : vector<1x256x128xbf16> to vector<256x128xbf16>
    %cst_60 = arith.constant dense<0.000000e+00> : vector<16x128xf32>
    %94 = tpu.matmul %91, %93, %cst_60 {dimension_numbers = #tpu.dot_dimension_numbers<[1], [0], [0], [1], [0, 0, 1, 1], [], []>} : vector<16x256xbf16>, vector<256x128xbf16>, vector<16x128xf32> -> vector<16x128xf32>
    %95 = arith.addf %87, %94 : vector<16x128xf32>
    %96 = vector.extract_strided_slice %63 {offsets = [2, 0], sizes = [8, 256], strides = [1, 1]} : vector<14x256xf32> to vector<8x256xf32>
    %97 = vector.extract_strided_slice %78 {offsets = [2, 0], sizes = [8, 256], strides = [1, 1]} : vector<14x256xf32> to vector<8x256xf32>
    %98 = tpu.concatenate %96, %97 in 0 : vector<8x256xf32>, vector<8x256xf32> -> vector<16x256xf32>
    %99 = arith.truncf %98 : vector<16x256xf32> to vector<16x256xbf16>
    %c2_61 = arith.constant 2 : index
    %c0_62 = arith.constant 0 : index
    %c0_63 = arith.constant 0 : index
    %100 = vector.load %arg6[%c2_61, %c0_62, %c0_63] : memref<7x256x128xbf16, #tpu.memory_space<vmem>>, vector<1x256x128xbf16>
    %101 = vector.shape_cast %100 : vector<1x256x128xbf16> to vector<256x128xbf16>
    %cst_64 = arith.constant dense<0.000000e+00> : vector<16x128xf32>
    %102 = tpu.matmul %99, %101, %cst_64 {dimension_numbers = #tpu.dot_dimension_numbers<[1], [0], [0], [1], [0, 0, 1, 1], [], []>} : vector<16x256xbf16>, vector<256x128xbf16>, vector<16x128xf32> -> vector<16x128xf32>
    %103 = arith.addf %95, %102 : vector<16x128xf32>
    %104 = vector.extract_strided_slice %63 {offsets = [3, 0], sizes = [8, 256], strides = [1, 1]} : vector<14x256xf32> to vector<8x256xf32>
    %105 = vector.extract_strided_slice %78 {offsets = [3, 0], sizes = [8, 256], strides = [1, 1]} : vector<14x256xf32> to vector<8x256xf32>
    %106 = tpu.concatenate %104, %105 in 0 : vector<8x256xf32>, vector<8x256xf32> -> vector<16x256xf32>
    %107 = arith.truncf %106 : vector<16x256xf32> to vector<16x256xbf16>
    %c3 = arith.constant 3 : index
    %c0_65 = arith.constant 0 : index
    %c0_66 = arith.constant 0 : index
    %108 = vector.load %arg6[%c3, %c0_65, %c0_66] : memref<7x256x128xbf16, #tpu.memory_space<vmem>>, vector<1x256x128xbf16>
    %109 = vector.shape_cast %108 : vector<1x256x128xbf16> to vector<256x128xbf16>
    %cst_67 = arith.constant dense<0.000000e+00> : vector<16x128xf32>
    %110 = tpu.matmul %107, %109, %cst_67 {dimension_numbers = #tpu.dot_dimension_numbers<[1], [0], [0], [1], [0, 0, 1, 1], [], []>} : vector<16x256xbf16>, vector<256x128xbf16>, vector<16x128xf32> -> vector<16x128xf32>
    %111 = arith.addf %103, %110 : vector<16x128xf32>
    %112 = vector.extract_strided_slice %63 {offsets = [4, 0], sizes = [8, 256], strides = [1, 1]} : vector<14x256xf32> to vector<8x256xf32>
    %113 = vector.extract_strided_slice %78 {offsets = [4, 0], sizes = [8, 256], strides = [1, 1]} : vector<14x256xf32> to vector<8x256xf32>
    %114 = tpu.concatenate %112, %113 in 0 : vector<8x256xf32>, vector<8x256xf32> -> vector<16x256xf32>
    %115 = arith.truncf %114 : vector<16x256xf32> to vector<16x256xbf16>
    %c4 = arith.constant 4 : index
    %c0_68 = arith.constant 0 : index
    %c0_69 = arith.constant 0 : index
    %116 = vector.load %arg6[%c4, %c0_68, %c0_69] : memref<7x256x128xbf16, #tpu.memory_space<vmem>>, vector<1x256x128xbf16>
    %117 = vector.shape_cast %116 : vector<1x256x128xbf16> to vector<256x128xbf16>
    %cst_70 = arith.constant dense<0.000000e+00> : vector<16x128xf32>
    %118 = tpu.matmul %115, %117, %cst_70 {dimension_numbers = #tpu.dot_dimension_numbers<[1], [0], [0], [1], [0, 0, 1, 1], [], []>} : vector<16x256xbf16>, vector<256x128xbf16>, vector<16x128xf32> -> vector<16x128xf32>
    %119 = arith.addf %111, %118 : vector<16x128xf32>
    %120 = vector.extract_strided_slice %63 {offsets = [5, 0], sizes = [8, 256], strides = [1, 1]} : vector<14x256xf32> to vector<8x256xf32>
    %121 = vector.extract_strided_slice %78 {offsets = [5, 0], sizes = [8, 256], strides = [1, 1]} : vector<14x256xf32> to vector<8x256xf32>
    %122 = tpu.concatenate %120, %121 in 0 : vector<8x256xf32>, vector<8x256xf32> -> vector<16x256xf32>
    %123 = arith.truncf %122 : vector<16x256xf32> to vector<16x256xbf16>
    %c5 = arith.constant 5 : index
    %c0_71 = arith.constant 0 : index
    %c0_72 = arith.constant 0 : index
    %124 = vector.load %arg6[%c5, %c0_71, %c0_72] : memref<7x256x128xbf16, #tpu.memory_space<vmem>>, vector<1x256x128xbf16>
    %125 = vector.shape_cast %124 : vector<1x256x128xbf16> to vector<256x128xbf16>
    %cst_73 = arith.constant dense<0.000000e+00> : vector<16x128xf32>
    %126 = tpu.matmul %123, %125, %cst_73 {dimension_numbers = #tpu.dot_dimension_numbers<[1], [0], [0], [1], [0, 0, 1, 1], [], []>} : vector<16x256xbf16>, vector<256x128xbf16>, vector<16x128xf32> -> vector<16x128xf32>
    %127 = arith.addf %119, %126 : vector<16x128xf32>
    %128 = vector.extract_strided_slice %63 {offsets = [6, 0], sizes = [8, 256], strides = [1, 1]} : vector<14x256xf32> to vector<8x256xf32>
    %129 = vector.extract_strided_slice %78 {offsets = [6, 0], sizes = [8, 256], strides = [1, 1]} : vector<14x256xf32> to vector<8x256xf32>
    %130 = tpu.concatenate %128, %129 in 0 : vector<8x256xf32>, vector<8x256xf32> -> vector<16x256xf32>
    %131 = arith.truncf %130 : vector<16x256xf32> to vector<16x256xbf16>
    %c6 = arith.constant 6 : index
    %c0_74 = arith.constant 0 : index
    %c0_75 = arith.constant 0 : index
    %132 = vector.load %arg6[%c6, %c0_74, %c0_75] : memref<7x256x128xbf16, #tpu.memory_space<vmem>>, vector<1x256x128xbf16>
    %133 = vector.shape_cast %132 : vector<1x256x128xbf16> to vector<256x128xbf16>
    %cst_76 = arith.constant dense<0.000000e+00> : vector<16x128xf32>
    %134 = tpu.matmul %131, %133, %cst_76 {dimension_numbers = #tpu.dot_dimension_numbers<[1], [0], [0], [1], [0, 0, 1, 1], [], []>} : vector<16x256xbf16>, vector<256x128xbf16>, vector<16x128xf32> -> vector<16x128xf32>
    %135 = arith.addf %127, %134 : vector<16x128xf32>
    %136 = vector.broadcast %0 : f32 to vector<16x128xf32>
    %137 = arith.addf %135, %136 : vector<16x128xf32>
    %138 = vector.extract_strided_slice %137 {offsets = [0, 0], sizes = [8, 128], strides = [1, 1]} : vector<16x128xf32> to vector<8x128xf32>
    %139 = vector.shape_cast %138 : vector<8x128xf32> to vector<1x8x128xf32>
    %cst_77 = arith.constant dense<0.000000e+00> : vector<1xf32>
    %140 = vector.multi_reduction <add>, %139, %cst_77 [1, 2] : vector<1x8x128xf32> to vector<1xf32>
    %141 = vector.shape_cast %140 : vector<1xf32> to vector<1x1x1xf32>
    %142 = vector.extract %141[0, 0, 0] : f32 from vector<1x1x1xf32>
    %cst_78 = arith.constant 1.024000e+03 : f32
    %143 = arith.divf %142, %cst_78 : f32
    %144 = vector.broadcast %143 : f32 to vector<8x128xf32>
    %145 = arith.subf %138, %144 : vector<8x128xf32>
    %146 = arith.mulf %145, %145 : vector<8x128xf32>
    %147 = vector.shape_cast %146 : vector<8x128xf32> to vector<1x8x128xf32>
    %cst_79 = arith.constant dense<0.000000e+00> : vector<1xf32>
    %148 = vector.multi_reduction <add>, %147, %cst_79 [1, 2] : vector<1x8x128xf32> to vector<1xf32>
    %149 = vector.shape_cast %148 : vector<1xf32> to vector<1x1x1xf32>
    %150 = vector.extract %149[0, 0, 0] : f32 from vector<1x1x1xf32>
    %cst_80 = arith.constant 1.024000e+03 : f32
    %151 = arith.divf %150, %cst_80 : f32
    %152 = vector.broadcast %143 : f32 to vector<8x128xf32>
    %153 = arith.subf %138, %152 : vector<8x128xf32>
    %cst_81 = arith.constant 9.99999974E-6 : f32
    %154 = arith.addf %151, %cst_81 : f32
    %155 = math.rsqrt %154 : f32
    %156 = vector.broadcast %155 : f32 to vector<8x128xf32>
    %157 = arith.mulf %153, %156 : vector<8x128xf32>
    %158 = vector.broadcast %1 : f32 to vector<8x128xf32>
    %159 = arith.mulf %157, %158 : vector<8x128xf32>
    %160 = vector.broadcast %2 : f32 to vector<8x128xf32>
    %161 = arith.addf %159, %160 : vector<8x128xf32>
    %cst_82 = arith.constant 0.000000e+00 : f32
    %162 = vector.broadcast %cst_82 : f32 to vector<8x128xf32>
    %163 = arith.cmpf oge, %161, %162 : vector<8x128xf32>
    %cst_83 = arith.constant 0.00999999977 : f32
    %164 = vector.broadcast %cst_83 : f32 to vector<8x128xf32>
    %165 = arith.mulf %164, %161 : vector<8x128xf32>
    %166 = arith.select %163, %161, %165 : vector<8x128xi1>, vector<8x128xf32>
    %cst_84 = arith.constant 0.000000e+00 : f32
    %167 = vector.broadcast %cst_84 : f32 to vector<8x128xf32>
    %168 = arith.subf %167, %166 : vector<8x128xf32>
    %169 = math.exp %168 : vector<8x128xf32>
    %cst_85 = arith.constant 1.000000e+00 : f32
    %170 = vector.broadcast %cst_85 : f32 to vector<8x128xf32>
    %171 = arith.addf %170, %169 : vector<8x128xf32>
    %172 = tpu.reciprocal %171 {approx = true} : vector<8x128xf32> -> vector<8x128xf32>
    %c0_86 = arith.constant 0 : index
    %c0_87 = arith.constant 0 : index
    %c0_88 = arith.constant 0 : index
    %c0_89 = arith.constant 0 : index
    %173 = vector.load %arg5[%c0_86, %c0_87, %c0_88, %c0_89] : memref<2x16x8x128xf32, #tpu.memory_space<vmem>>, vector<1x16x8x128xf32>
    %174 = vector.shape_cast %173 : vector<1x16x8x128xf32> to vector<16x8x128xf32>
    %175 = vector.shape_cast %172 : vector<8x128xf32> to vector<1x8x128xf32>
    %176 = vector.broadcast %175 : vector<1x8x128xf32> to vector<16x8x128xf32>
    %177 = arith.mulf %174, %176 : vector<16x8x128xf32>
    %c0_90 = arith.constant 0 : index
    %c0_91 = arith.constant 0 : index
    %c0_92 = arith.constant 0 : index
    %c0_93 = arith.constant 0 : index
    %178 = vector.load %arg5[%c0_90, %c0_91, %c0_92, %c0_93] : memref<2x16x8x128xf32, #tpu.memory_space<vmem>>, vector<1x16x8x128xf32>
    %179 = vector.shape_cast %178 : vector<1x16x8x128xf32> to vector<16x8x128xf32>
    %180 = vector.shape_cast %177 : vector<16x8x128xf32> to vector<1x16x8x128xf32>
    tpu.vector_store %arg5[%c0_90, %c0_91, %c0_92, %c0_93], %180 {strides = array<i32>} : memref<2x16x8x128xf32, #tpu.memory_space<vmem>>, vector<1x16x8x128xf32>,
    %181 = vector.extract_strided_slice %137 {offsets = [8, 0], sizes = [8, 128], strides = [1, 1]} : vector<16x128xf32> to vector<8x128xf32>
    %182 = vector.shape_cast %181 : vector<8x128xf32> to vector<1x8x128xf32>
    %cst_94 = arith.constant dense<0.000000e+00> : vector<1xf32>
    %183 = vector.multi_reduction <add>, %182, %cst_94 [1, 2] : vector<1x8x128xf32> to vector<1xf32>
    %184 = vector.shape_cast %183 : vector<1xf32> to vector<1x1x1xf32>
    %185 = vector.extract %184[0, 0, 0] : f32 from vector<1x1x1xf32>
    %cst_95 = arith.constant 1.024000e+03 : f32
    %186 = arith.divf %185, %cst_95 : f32
    %187 = vector.broadcast %186 : f32 to vector<8x128xf32>
    %188 = arith.subf %181, %187 : vector<8x128xf32>
    %189 = arith.mulf %188, %188 : vector<8x128xf32>
    %190 = vector.shape_cast %189 : vector<8x128xf32> to vector<1x8x128xf32>
    %cst_96 = arith.constant dense<0.000000e+00> : vector<1xf32>
    %191 = vector.multi_reduction <add>, %190, %cst_96 [1, 2] : vector<1x8x128xf32> to vector<1xf32>
    %192 = vector.shape_cast %191 : vector<1xf32> to vector<1x1x1xf32>
    %193 = vector.extract %192[0, 0, 0] : f32 from vector<1x1x1xf32>
    %cst_97 = arith.constant 1.024000e+03 : f32
    %194 = arith.divf %193, %cst_97 : f32
    %195 = vector.broadcast %186 : f32 to vector<8x128xf32>
    %196 = arith.subf %181, %195 : vector<8x128xf32>
    %cst_98 = arith.constant 9.99999974E-6 : f32
    %197 = arith.addf %194, %cst_98 : f32
    %198 = math.rsqrt %197 : f32
    %199 = vector.broadcast %198 : f32 to vector<8x128xf32>
    %200 = arith.mulf %196, %199 : vector<8x128xf32>
    %201 = vector.broadcast %1 : f32 to vector<8x128xf32>
    %202 = arith.mulf %200, %201 : vector<8x128xf32>
    %203 = vector.broadcast %2 : f32 to vector<8x128xf32>
    %204 = arith.addf %202, %203 : vector<8x128xf32>
    %cst_99 = arith.constant 0.000000e+00 : f32
    %205 = vector.broadcast %cst_99 : f32 to vector<8x128xf32>
    %206 = arith.cmpf oge, %204, %205 : vector<8x128xf32>
    %cst_100 = arith.constant 0.00999999977 : f32
    %207 = vector.broadcast %cst_100 : f32 to vector<8x128xf32>
    %208 = arith.mulf %207, %204 : vector<8x128xf32>
    %209 = arith.select %206, %204, %208 : vector<8x128xi1>, vector<8x128xf32>
    %cst_101 = arith.constant 0.000000e+00 : f32
    %210 = vector.broadcast %cst_101 : f32 to vector<8x128xf32>
    %211 = arith.subf %210, %209 : vector<8x128xf32>
    %212 = math.exp %211 : vector<8x128xf32>
    %cst_102 = arith.constant 1.000000e+00 : f32
    %213 = vector.broadcast %cst_102 : f32 to vector<8x128xf32>
    %214 = arith.addf %213, %212 : vector<8x128xf32>
    %215 = tpu.reciprocal %214 {approx = true} : vector<8x128xf32> -> vector<8x128xf32>
    %c1_103 = arith.constant 1 : index
    %c0_104 = arith.constant 0 : index
    %c0_105 = arith.constant 0 : index
    %c0_106 = arith.constant 0 : index
    %216 = vector.load %arg5[%c1_103, %c0_104, %c0_105, %c0_106] : memref<2x16x8x128xf32, #tpu.memory_space<vmem>>, vector<1x16x8x128xf32>
    %217 = vector.shape_cast %216 : vector<1x16x8x128xf32> to vector<16x8x128xf32>
    %218 = vector.shape_cast %215 : vector<8x128xf32> to vector<1x8x128xf32>
    %219 = vector.broadcast %218 : vector<1x8x128xf32> to vector<16x8x128xf32>
    %220 = arith.mulf %217, %219 : vector<16x8x128xf32>
    %c1_107 = arith.constant 1 : index
    %c0_108 = arith.constant 0 : index
    %c0_109 = arith.constant 0 : index
    %c0_110 = arith.constant 0 : index
    %221 = vector.load %arg5[%c1_107, %c0_108, %c0_109, %c0_110] : memref<2x16x8x128xf32, #tpu.memory_space<vmem>>, vector<1x16x8x128xf32>
    %222 = vector.shape_cast %221 : vector<1x16x8x128xf32> to vector<16x8x128xf32>
    %223 = vector.shape_cast %220 : vector<16x8x128xf32> to vector<1x16x8x128xf32>
    tpu.vector_store %arg5[%c1_107, %c0_108, %c0_109, %c0_110], %223 {strides = array<i32>} : memref<2x16x8x128xf32, #tpu.memory_space<vmem>>, vector<1x16x8x128xf32>,
    return
  }
  func.func @transform_0(%arg0: i32) -> i32 {
    %c0_i32 = arith.constant 0 : i32
    %c0_i32_0 = arith.constant 0 : i32
    return %c0_i32 : i32
  }
  func.func @transform_1(%arg0: i32) -> (i32, i32) {
    %c0_i32 = arith.constant 0 : i32
    %c0_i32_0 = arith.constant 0 : i32
    %c0_i32_1 = arith.constant 0 : i32
    return %c0_i32, %c0_i32_0 : i32, i32
  }
  func.func @transform_2(%arg0: i32) -> (i32, i32, i32, i32) {
    %c0_i32 = arith.constant 0 : i32
    %c0_i32_0 = arith.constant 0 : i32
    %c0_i32_1 = arith.constant 0 : i32
    %c0_i32_2 = arith.constant 0 : i32
    %c0_i32_3 = arith.constant 0 : i32
    return %c0_i32, %c0_i32_0, %c0_i32_1, %c0_i32_2 : i32, i32, i32, i32
  }
  func.func @transform_4(%arg0: i32) -> (i32, i32, i32, i32) {
    %c0_i32 = arith.constant 0 : i32
    %c0_i32_0 = arith.constant 0 : i32
    %c0_i32_1 = arith.constant 0 : i32
    %c0_i32_2 = arith.constant 0 : i32
    %c0_i32_3 = arith.constant 0 : i32
    return %c0_i32, %c0_i32_0, %c0_i32_1, %c0_i32_2 : i32, i32, i32, i32
  }
}

</mosaic_0001>

<bundles_post_ra>
// kernel: tpu_custom_call.1
= control target key start
LH: loop header
LB: loop body
LE: loop exit
PB: predicated region body
PF: predicated region fallthrough
CT: control target
= control target key end

     0   :  { %9 = vsyncpa [#allocation7], 0  ;;  %s3137_s0 = inlined_call_operand.vmem [shape: f32[3], index: 0, kind: input, shape index: {}]   ;;  %s3138_s1 = inlined_call_operand.vmem [shape: f32[48,16], index: 1, kind: input, shape index: {}]   ;;  %s3139_s2 = inlined_call_operand.hbm [shape: f32[2,16,8,128], index: 2, kind: input, shape index: {}]   ;;  %s3140_s3 = inlined_call_operand.hbm [shape: bf16[7,256,128], index: 3, kind: input, shape index: {}]   ;;  %s3141_s4 = inlined_call_operand.hbm [shape: f32[2,16,8,128], index: 4, kind: output, shape index: {}]  }
   0x1   :  { %10 = vsyncpa [#allocation5], 0 }
   0x2   :  { %11 = vsyncpa [#allocation6], 0  ;;  %s18_s17 = sshll.u32 %s3137_s0, 4  ;;  %s19_s17 = int_to_ptr.vmem [resolvable:$true] %s18_s17 }
   0x3   :  { %s2340_s18 = scalar_lea.vmem %s19_s17, 16  ;;  %p2345_p1 = scmp.lt.s32.totalorder %s19_s17, %s19_s17 }
   0x4   :  { %p2341_p0 = scmp.ne.s32.totalorder %s19_s17, %s2340_s18  ;;  %p2346_p2 = scmp.lt.s32.totalorder %s2340_s18, %s2340_s18 }
   0x6   :  { %p2347_p3 = por %p2346_p2, %p2345_p1 }
   0x8   :  { %p2348_p4 = pnand %p2347_p3, %p2341_p0 }
   0xa   :  { %2351 = shalt.err (!%p2348_p4)
}
   0xb   :  { %s2426_s19 = smov [#allocation4]   ;;  %s2427_s20 = smov [#allocation8]  }
   0xc   :  { %21 = dma.vmem_to_smem %s19_s17, 16, %s2426_s19, [#allocation7]  }
   0xd   :  { %s29_s21 = sshll.u32 %s2427_s20, 4  ;;  %s2352_s24 = scalar_lea.hbm %s3139_s2, 4096  ;;  %s30_s21 = int_to_ptr.vmem [resolvable:$true] %s29_s21 }
   0xe   :  { %p2353_p5 = scmp.ne.s32.totalorder %s3139_s2, %s2352_s24  ;;  %p2356_p6 = scmp.lt.u32.totalorder %s2352_s24, %s3139_s2 }
  0x10   :  { %p2358_p7 = pnand %p2356_p6, %p2353_p5 }
  0x12   :  { %2361 = shalt.err (!%p2358_p7)
}
  0x13   :  { %s2362_s28 = scalar_lea.vmem %s30_s21, 4096  ;;  %p2367_p9 = scmp.lt.s32.totalorder %s30_s21, %s30_s21 }
  0x14   :  { %p2363_p8 = scmp.ne.s32.totalorder %s30_s21, %s2362_s28  ;;  %p2368_p10 = scmp.lt.s32.totalorder %s2362_s28, %s2362_s28 }
  0x16   :  { %p2369_p11 = por %p2368_p10, %p2367_p9 }
  0x18   :  { %p2370_p12 = pnand %p2369_p11, %p2363_p8 }
  0x1a   :  { %2373 = shalt.err (!%p2370_p12)
}
  0x1b   :  { %s2428_s29 = smov 128   ;;  %s2429_s30 = smov 8  }
  0x1c   :  { %35 = dma.hbm_to_vmem [thread:$0]  %s3139_s2, 4096, %s30_s21, [#allocation5], %s2428_s29, %s2428_s29, %s2429_s30  }
  0x1d   :  { %2418 = dma.done.wait [#allocation7], 16  }
  0x1e   :  { %2419 = vsyncadd [#allocation7], 4294967280 }
  0x1f   :  { %2420 = dma.done.wait [#allocation5], 4096  }
  0x20   :  { %2421 = vsyncadd [#allocation5], 4294963200 }
  0x21   :  { %42 = sfence }
  0x22   :  { %v2479_v0 = vld [vmem:[#allocation8 + $0x40] sm:$0xff]  ;;  %v2485_v2 = vld [vmem:[#allocation8 + $0x48] sm:$0xff]  ;;  %v2497_v8 = vld [vmem:[#allocation8 + $0x50] sm:$0xff]  ;;  %v128_v32 = vlaneseq  ;;  %vm194_vm0 = vcmask 1041409   ;;  %vm196_vm1 = vcmask 1042434   ;;  %vm198_vm2 = vcmask 1043459  }
  0x23   :  { %v2481_v1 = vld [vmem:[#allocation8] sm:$0xff]  ;;  %96 = vadd.xlane.f32.xlu1 %v2479_v0  ;;  %v65_v3 = vld [vmem:[#allocation8 + $0x8] sm:$0xff]  ;;  %v66_v9 = vld [vmem:[#allocation8 + $0x10] sm:$0xff]  ;;  %vm200_vm3 = vcmask 1044484   ;;  %vm202_vm4 = vcmask 1045509   ;;  %vm204_vm5 = vcmask 1046534  }
  0x24   :  { %80 = vadd.xlane.f32.xlu0 %v2481_v1  ;;  %v362_v4 = vld [vmem:[#allocation8 + $0x88] sm:$0xff]  ;;  %v2488_v5 = vld [vmem:[#allocation8 + $0x80] sm:$0xff]  ;;  %v2500_v10 = vld [vmem:[#allocation8 + $0xd0] sm:$0xff]  ;;  %v129_v33 = vand.u32 127, %v128_v32  ;;  %v2551_v34 = vshrl.u32 %v128_v32, 7  ;;  %vm206_vm6 = vcmask 1047559  }
  0x25   :  { %v2491_v6 = vld [vmem:[#allocation8 + $0xc8] sm:$0xff]  ;;  %v2493_v7 = vld [vmem:[#allocation8 + $0xc0] sm:$0xff]  ;;  %v363_v11 = vld [vmem:[#allocation8 + $0x90] sm:$0xff]  ;;  %vm217_vm7 = vcmask 64512   ;;  %s2783_s2 = sld [smem:[#allocation4]]  ;;  %s2785_s7 = sld [smem:[#allocation4 + $0x1]] }
  0x26   :  { %v75_v12 = vld [vmem:[#allocation8 + $0x58] sm:$0xff]  ;;  %v2512_v16 = vld [vmem:[#allocation8 + $0x60] sm:$0xff]  ;;  %v77_v20 = vld [vmem:[#allocation8 + $0x68] sm:$0xff]  ;;  %v2556_v37 = vsub.s32 %v129_v33, %v2551_v34  ;;  %s2787_s8 = sld [smem:[#allocation4 + $0x2]]  ;;  %vm666_vm8 = vcmask 130048   ;;  %vm647_vm9 = vcmask 7168  }
  0x27   :  { %98 = vadd.xlane.f32.xlu1 %v2485_v2  ;;  %v2503_v13 = vld [vmem:[#allocation8 + $0x18] sm:$0xff]  ;;  %v2514_v17 = vld [vmem:[#allocation8 + $0x20] sm:$0xff]  ;;  %v2521_v21 = vld [vmem:[#allocation8 + $0x28] sm:$0xff]  ;;  %vm650_vm10 = vcmask 15360   ;;  %vm653_vm11 = vcmask 23552   ;;  %s2432_s21 = smov 126  }
  0x28   :  { %82 = vadd.xlane.f32.xlu0 %v65_v3  ;;  %v2506_v14 = vld [vmem:[#allocation8 + $0xd8] sm:$0xff]  ;;  %3146 = vst [vmem:[#allocation18_spill] sm:$0xff] %v2514_v17  ;;  %v373_v18 = vld [vmem:[#allocation8 + $0xe0] sm:$0xff]  ;;  %v374_v22 = vld [vmem:[#allocation8 + $0xe8] sm:$0xff]  ;;  %s2374_s25 = scalar_lea.hbm %s3140_s3, 14336 }
  0x29   :  { %v2508_v15 = vld [vmem:[#allocation8 + $0x98] sm:$0xff]  ;;  %v365_v19 = vld [vmem:[#allocation8 + $0xa0] sm:$0xff]  ;;  %v2525_v23 = vld [vmem:[#allocation8 + $0xa8] sm:$0xff]  ;;  %p2375_p13 = scmp.ne.s32.totalorder %s3140_s3, %s2374_s25  ;;  %p2378_p0 = scmp.lt.u32.totalorder %s2374_s25, %s3140_s3 }
  0x2a   :  { %v78_v24 = vld [vmem:[#allocation8 + $0x70] sm:$0xff]  ;;  %v2533_v28 = vld [vmem:[#allocation8 + $0x78] sm:$0xff] }
  0x2b   :  { %379 = vadd.xlane.f32.xlu1 %v362_v4  ;;  %v70_v25 = vld [vmem:[#allocation8 + $0x30] sm:$0xff]  ;;  %3147 = vst [vmem:[#allocation19_spill] sm:$0xff] %v2533_v28  ;;  %v2535_v29 = vld [vmem:[#allocation8 + $0x38] sm:$0xff]  ;;  %p2380_p1 = pnand %p2378_p0, %p2375_p13 }
  0x2c   :  { %377 = vadd.xlane.f32.xlu0 %v2488_v5  ;;  %v375_v26 = vld [vmem:[#allocation8 + $0xf0] sm:$0xff]  ;;  %3148 = vst [vmem:[#allocation20_spill] sm:$0xff] %v2535_v29  ;;  %v2541_v30 = vld [vmem:[#allocation8 + $0xf8] sm:$0xff] }
  0x2d   :  { %v367_v27 = vld [vmem:[#allocation8 + $0xb0] sm:$0xff]  ;;  %3149 = vst [vmem:[#allocation21_spill] sm:$0xff] %v2541_v30  ;;  %v368_v31 = vld [vmem:[#allocation8 + $0xb8] sm:$0xff] }
  0x2f   :  { %395 = vadd.xlane.f32.xlu1 %v2491_v6 }
  0x30   :  { %393 = vadd.xlane.f32.xlu0 %v2493_v7 }
  0x33   :  { %100 = vadd.xlane.f32.xlu1 %v2497_v8 }
  0x34   :  { %84 = vadd.xlane.f32.xlu0 %v66_v9 }
  0x37   :  { %397 = vadd.xlane.f32.xlu1 %v2500_v10 }
  0x38   :  { %381 = vadd.xlane.f32.xlu0 %v363_v11 }
  0x3b   :  { %102 = vadd.xlane.f32.xlu1 %v75_v12 }
  0x3c   :  { %86 = vadd.xlane.f32.xlu0 %v2503_v13 }
  0x3f   :  { %399 = vadd.xlane.f32.xlu1 %v2506_v14 }
  0x40   :  { %383 = vadd.xlane.f32.xlu0 %v2508_v15 }
  0x43   :  { %104 = vadd.xlane.f32.xlu1 %v2512_v16 }
  0x44   :  { %88 = vadd.xlane.f32.xlu0 %v2514_v17 }
  0x47   :  { %228 = vmax.xlane.f32.xlu1 %v65_v3 }
  0x48   :  { %226 = vmax.xlane.f32.xlu0 %v2481_v1 }
  0x4b   :  { %244 = vmax.xlane.f32.xlu1 %v2485_v2 }
  0x4c   :  { %242 = vmax.xlane.f32.xlu0 %v2479_v0 }
  0x4f   :  { %401 = vadd.xlane.f32.xlu1 %v373_v18 }
  0x50   :  { %385 = vadd.xlane.f32.xlu0 %v365_v19 }
  0x53   :  { %106 = vadd.xlane.f32.xlu1 %v77_v20 }
  0x54   :  { %90 = vadd.xlane.f32.xlu0 %v2521_v21 }
  0x57   :  { %246 = vmax.xlane.f32.xlu1 %v2497_v8 }
  0x58   :  { %230 = vmax.xlane.f32.xlu0 %v66_v9 }
  0x5b   :  { %403 = vadd.xlane.f32.xlu1 %v374_v22 }
  0x5c   :  { %387 = vadd.xlane.f32.xlu0 %v2525_v23 }
  0x5f   :  { %515 = vmax.xlane.f32.xlu1 %v362_v4 }
  0x60   :  { %513 = vmax.xlane.f32.xlu0 %v2488_v5 }
  0x63   :  { %531 = vmax.xlane.f32.xlu1 %v2491_v6 }
  0x64   :  { %529 = vmax.xlane.f32.xlu0 %v2493_v7 }
  0x67   :  { %108 = vadd.xlane.f32.xlu1 %v78_v24 }
  0x68   :  { %92 = vadd.xlane.f32.xlu0 %v70_v25 }
  0x6b   :  { %248 = vmax.xlane.f32.xlu1 %v75_v12 }
  0x6c   :  { %232 = vmax.xlane.f32.xlu0 %v2503_v13 }
  0x6f   :  { %405 = vadd.xlane.f32.xlu1 %v375_v26 }
  0x70   :  { %389 = vadd.xlane.f32.xlu0 %v367_v27 }
  0x73   :  { %533 = vmax.xlane.f32.xlu1 %v2500_v10 }
  0x74   :  { %517 = vmax.xlane.f32.xlu0 %v363_v11 }
  0x77   :  { %110 = vadd.xlane.f32.xlu1 %v2533_v28 }
  0x78   :  { %94 = vadd.xlane.f32.xlu0 %v2535_v29 }
  0x7b   :  { %250 = vmax.xlane.f32.xlu1 %v2512_v16 }
  0x7c   :  { %234 = vmax.xlane.f32.xlu0 %v2514_v17 }
  0x7f   :  { %407 = vadd.xlane.f32.xlu1 %v2541_v30 }
  0x80   :  { %391 = vadd.xlane.f32.xlu0 %v368_v31 }
  0x83   :  { %535 = vmax.xlane.f32.xlu1 %v2506_v14 }
  0x84   :  { %519 = vmax.xlane.f32.xlu0 %v2508_v15 }
  0x87   :  { %252 = vmax.xlane.f32.xlu1 %v77_v20 }
  0x88   :  { %236 = vmax.xlane.f32.xlu0 %v2521_v21 }
  0x8b   :  { %537 = vmax.xlane.f32.xlu1 %v373_v18 }
  0x8c   :  { %521 = vmax.xlane.f32.xlu0 %v365_v19 }
  0x8f   :  { %254 = vmax.xlane.f32.xlu1 %v78_v24 }
  0x90   :  { %238 = vmax.xlane.f32.xlu0 %v70_v25 }
  0x93   :  { %539 = vmax.xlane.f32.xlu1 %v374_v22 }
  0x94   :  { %523 = vmax.xlane.f32.xlu0 %v2525_v23 }
  0x97   :  { %256 = vmax.xlane.f32.xlu1 %v2533_v28 }
  0x98   :  { %240 = vmax.xlane.f32.xlu0 %v2535_v29 }
  0x9b   :  { %541 = vmax.xlane.f32.xlu1 %v375_v26 }
  0x9c   :  { %525 = vmax.xlane.f32.xlu0 %v367_v27 }
  0x9f   :  { %543 = vmax.xlane.f32.xlu1 %v2541_v30 }
  0xa0   :  { %527 = vmax.xlane.f32.xlu0 %v368_v31 }
  0xb0   :  { %v2553_v35 = vpop.xlane.xlu1 %96 }
  0xb1   :  { %v81_v36 = vpop.xlane.xlu0 %80 }
  0xb2   :  { %v133_v40 = vrot.slane %v81_v36, %v2556_v37 }
  0xb4   :  { %v99_v38 = vpop.xlane.xlu1 %98 }
  0xb5   :  { %v83_v39 = vpop.xlane.xlu0 %82 }
  0xb6   :  { %v137_v41 = vrot.slane %v83_v39, %v2556_v37 }
  0xb8   :  { %v195_v42 = vsel %vm194_vm0, %v137_v41, %v133_v40  ;;  %v380_v43 = vpop.xlane.xlu1 %379 }
  0xb9   :  { %v378_v44 = vpop.xlane.xlu0 %377  ;;  %v432_v49 = vrot.slane %v380_v43, %v2556_v37  ;;  %v169_v43 = vrot.slane %v99_v38, %v2556_v37 }
  0xba   :  { %v428_v50 = vrot.slane %v378_v44, %v2556_v37 }
  0xbc   :  { %v2561_v45 = vpop.xlane.xlu1 %395  ;;  %v489_v54 = vsel %vm194_vm0, %v432_v49, %v428_v50  ;;  %v165_v50 = vrot.slane %v2553_v35, %v2556_v37 }
  0xbd   :  { %v2563_v46 = vpop.xlane.xlu0 %393 }
  0xc0   :  { %v101_v47 = vpop.xlane.xlu1 %100 }
  0xc1   :  { %v85_v48 = vpop.xlane.xlu0 %84  ;;  %v173_v44 = vrot.slane %v101_v47, %v2556_v37  ;;  %v208_v47 = vsel %vm194_vm0, %v169_v43, %v165_v50 }
  0xc2   :  { %v141_v49 = vrot.slane %v85_v48, %v2556_v37 }
  0xc4   :  { %v2567_v51 = vpop.xlane.xlu1 %397 }
  0xc5   :  { %v382_v52 = vpop.xlane.xlu0 %381 }
  0xc6   :  { %v436_v53 = vrot.slane %v382_v52, %v2556_v37 }
  0xc8   :  { %v2572_v55 = vsel %vm196_vm1, %v436_v53, %v489_v54  ;;  %v103_v56 = vpop.xlane.xlu1 %102 }
  0xc9   :  { %v87_v57 = vpop.xlane.xlu0 %86  ;;  %v177_v52 = vrot.slane %v103_v56, %v2556_v37  ;;  %v209_v56 = vsel %vm196_vm1, %v173_v44, %v208_v47 }
  0xca   :  { %v145_v53 = vrot.slane %v87_v57, %v2556_v37  ;;  %v197_v57 = vsel %vm196_vm1, %v141_v49, %v195_v42 }
  0xcb   :  { %v210_v29 = vsel %vm198_vm2, %v177_v52, %v209_v56 }
  0xcc   :  { %v2574_v58 = vpop.xlane.xlu1 %399  ;;  %v199_v17 = vsel %vm198_vm2, %v145_v53, %v197_v57 }
  0xcd   :  { %v2576_v59 = vpop.xlane.xlu0 %383 }
  0xd0   :  { %v105_v60 = vpop.xlane.xlu1 %104 }
  0xd1   :  { %v89_v61 = vpop.xlane.xlu0 %88  ;;  %v181_v54 = vrot.slane %v105_v60, %v2556_v37 }
  0xd2   :  { %v149_v30 = vrot.slane %v89_v61, %v2556_v37 }
  0xd3   :  { %v211_v43 = vsel %vm200_vm3, %v181_v54, %v210_v29  ;;  %v440_v29 = vrot.slane %v2576_v59, %v2556_v37 }
  0xd4   :  { %v2578_v62 = vpop.xlane.xlu1 %228  ;;  %v201_v42 = vsel %vm200_vm3, %v149_v30, %v199_v17  ;;  %v472_v17 = vrot.slane %v2574_v58, %v2556_v37 }
  0xd5   :  { %v2580_v63 = vpop.xlane.xlu0 %226 }
  0xd8   :  { %v2582_v3 = vpop.xlane.xlu1 %244 }
  0xd9   :  { %v2584_v4 = vpop.xlane.xlu0 %242 }
  0xdc   :  { %v2586_v9 = vpop.xlane.xlu1 %401 }
  0xdd   :  { %v2588_v11 = vpop.xlane.xlu0 %385  ;;  %v476_v47 = vrot.slane %v2586_v9, %v2556_v37 }
  0xe0   :  { %v107_v12 = vpop.xlane.xlu1 %106 }
  0xe1   :  { %v91_v18 = vpop.xlane.xlu0 %90  ;;  %v185_v48 = vrot.slane %v107_v12, %v2556_v37  ;;  %v464_v12 = vrot.slane %v2561_v45, %v2556_v37  ;;  %v468_v45 = vrot.slane %v2567_v51, %v2556_v37  ;;  %v444_v51 = vrot.slane %v2588_v11, %v2556_v37 }
  0xe2   :  { %v153_v35 = vrot.slane %v91_v18, %v2556_v37  ;;  %v460_v18 = vrot.slane %v2563_v46, %v2556_v37 }
  0xe4   :  { %v2590_v19 = vpop.xlane.xlu1 %246  ;;  %v203_v49 = vsel %vm202_vm4, %v153_v35, %v201_v42  ;;  %v496_v59 = vsel %vm194_vm0, %v464_v12, %v460_v18  ;;  %v491_v12 = vsel %vm198_vm2, %v440_v29, %v2572_v55 }
  0xe5   :  { %v2592_v20 = vpop.xlane.xlu0 %230  ;;  %v497_v9 = vsel %vm196_vm1, %v468_v45, %v496_v59  ;;  %v492_v18 = vsel %vm200_vm3, %v444_v51, %v491_v12  ;;  %v313_v59 = vrot.slane %v2582_v3, %v2556_v37 }
  0xe8   :  { %v2594_v22 = vpop.xlane.xlu1 %403 }
  0xe9   :  { %v2596_v24 = vpop.xlane.xlu0 %387  ;;  %v480_v57 = vrot.slane %v2594_v22, %v2556_v37 }
  0xec   :  { %v2598_v25 = vpop.xlane.xlu1 %515 }
  0xed   :  { %v2600_v26 = vpop.xlane.xlu0 %513 }
  0xf0   :  { %v2602_v27 = vpop.xlane.xlu1 %531 }
  0xf1   :  { %v2604_v31 = vpop.xlane.xlu0 %529 }
  0xf4   :  { %v109_v32 = vpop.xlane.xlu1 %108 }
  0xf5   :  { %v93_v33 = vpop.xlane.xlu0 %92  ;;  %v189_v60 = vrot.slane %v109_v32, %v2556_v37 }
  0xf6   :  { %v157_v61 = vrot.slane %v93_v33, %v2556_v37  ;;  %v212_v33 = vsel %vm202_vm4, %v185_v48, %v211_v43  ;;  %v498_v43 = vsel %vm198_vm2, %v472_v17, %v497_v9  ;;  %v285_v9 = vrot.slane %v2592_v20, %v2556_v37 }
  0xf7   :  { %v213_v53 = vsel %vm204_vm5, %v189_v60, %v212_v33  ;;  %v448_v60 = vrot.slane %v2596_v24, %v2556_v37  ;;  %v499_v22 = vsel %vm200_vm3, %v476_v47, %v498_v43 }
  0xf8   :  { %v2606_v36 = vpop.xlane.xlu1 %248  ;;  %v205_v46 = vsel %vm204_vm5, %v157_v61, %v203_v49 }
  0xf9   :  { %v2608_v39 = vpop.xlane.xlu0 %232 }
  0xfa   :  { %v289_v3 = vrot.slane %v2608_v39, %v2556_v37 }
  0xfc   :  { %v2610_v40 = vpop.xlane.xlu1 %405 }
  0xfd   :  { %v2612_v41 = vpop.xlane.xlu0 %389  ;;  %v484_v11 = vrot.slane %v2610_v40, %v2556_v37 }
  0xfe   :  { %v452_v61 = vrot.slane %v2612_v41, %v2556_v37 }
 0x100   :  { %v2623_v28 = vpop.xlane.xlu1 %533 }
 0x101   :  { %v2625_v38 = vpop.xlane.xlu0 %517 }
 0x104   :  { %v111_v44 = vpop.xlane.xlu1 %110 }
 0x105   :  { %v95_v32 = vpop.xlane.xlu0 %94  ;;  %v193_v50 = vrot.slane %v111_v44, %v2556_v37  ;;  %v500_v44 = vsel %vm202_vm4, %v480_v57, %v499_v22  ;;  %v309_v57 = vrot.slane %v2584_v4, %v2556_v37 }
 0x106   :  { %v161_v52 = vrot.slane %v95_v32, %v2556_v37  ;;  %v493_v32 = vsel %vm202_vm4, %v448_v60, %v492_v18  ;;  %v501_v41 = vsel %vm204_vm5, %v484_v11, %v500_v44  ;;  %v317_v60 = vrot.slane %v2590_v19, %v2556_v37 }
 0x107   :  { %v214_v30 = vsel %vm206_vm6, %v193_v50, %v213_v53  ;;  %v494_v49 = vsel %vm204_vm5, %v452_v61, %v493_v32  ;;  %v568_v11 = vrot.slane %v2598_v25, %v2556_v37  ;;  %v345_v25 = vsel %vm194_vm0, %v313_v59, %v309_v57 }
 0x108   :  { %v207_v54 = vsel %vm206_vm6, %v161_v52, %v205_v46  ;;  %v2660_v48 = vpop.xlane.xlu1 %250  ;;  %v221_v56 = vsel %vm217_vm7, %v214_v30, 0.0  ;;  %v596_v44 = vrot.slane %v2604_v31, %v2556_v37  ;;  %v572_v31 = vrot.slane %v2625_v38, %v2556_v37 }
 0x109   :  { %v2662_v35 = vpop.xlane.xlu0 %234  ;;  %v218_v58 = vsel %vm217_vm7, %v207_v54, 0.0  ;;  %222 = vadd.xlane.f32.xlu1 %v221_v56  ;;  %v281_v56 = vrot.slane %v2578_v62, %v2556_v37  ;;  %v564_v62 = vrot.slane %v2600_v26, %v2556_v37  ;;  %v325_v4 = vrot.slane %v2660_v48, %v2556_v37 }
 0x10a   :  { %219 = vadd.xlane.f32.xlu0 %v218_v58  ;;  %v277_v58 = vrot.slane %v2580_v63, %v2556_v37  ;;  %v321_v63 = vrot.slane %v2606_v36, %v2556_v37  ;;  %v293_v19 = vrot.slane %v2662_v35, %v2556_v37  ;;  %v346_v36 = vsel %vm196_vm1, %v317_v60, %v345_v25 }
 0x10b   :  { %v625_v35 = vsel %vm194_vm0, %v568_v11, %v564_v62 }
 0x10c   :  { %v408_v24 = vpop.xlane.xlu1 %407  ;;  %v338_v43 = vsel %vm194_vm0, %v281_v56, %v277_v58  ;;  %v347_v18 = vsel %vm198_vm2, %v321_v63, %v346_v36 }
 0x10d   :  { %v392_v42 = vpop.xlane.xlu0 %391  ;;  %v488_v40 = vrot.slane %v408_v24, %v2556_v37  ;;  %v339_v39 = vsel %vm196_vm1, %v285_v9, %v338_v43  ;;  %v348_v32 = vsel %vm200_vm3, %v325_v4, %v347_v18 }
 0x10e   :  { %v456_v33 = vrot.slane %v392_v42, %v2556_v37  ;;  %v340_v24 = vsel %vm198_vm2, %v289_v3, %v339_v39  ;;  %v600_v42 = vrot.slane %v2602_v27, %v2556_v37  ;;  %v604_v27 = vrot.slane %v2623_v28, %v2556_v37 }
 0x10f   :  { %v502_v55 = vsel %vm206_vm6, %v488_v40, %v501_v41  ;;  %v341_v40 = vsel %vm200_vm3, %v293_v19, %v340_v24  ;;  %v63_v24 = vld [vmem:[%s3138_s1 + $0x28] sm:$0xff] }
 0x110   :  { %v495_v50 = vsel %vm206_vm6, %v456_v33, %v494_v49  ;;  %v2689_v52 = vpop.xlane.xlu1 %535  ;;  %v508_v53 = vsel %vm217_vm7, %v502_v55, 0.0 }
 0x111   :  { %v2691_v45 = vpop.xlane.xlu0 %519  ;;  %v505_v46 = vsel %vm217_vm7, %v495_v50, 0.0  ;;  %509 = vadd.xlane.f32.xlu1 %v508_v53 }
 0x112   :  { %506 = vadd.xlane.f32.xlu0 %v505_v46 }
 0x114   :  { %v253_v17 = vpop.xlane.xlu1 %252 }
 0x115   :  { %v237_v29 = vpop.xlane.xlu0 %236  ;;  %v329_v26 = vrot.slane %v253_v17, %v2556_v37 }
 0x116   :  { %v297_v12 = vrot.slane %v237_v29, %v2556_v37  ;;  %v608_v29 = vrot.slane %v2689_v52, %v2556_v37  ;;  %v632_v52 = vsel %vm194_vm0, %v600_v42, %v596_v44  ;;  %v62_v42 = vld [vmem:[%s3138_s1 + $0x20] sm:$0xff]  ;;  %v2430_v44 = vmov 0  }
 0x117   :  { %v349_v49 = vsel %vm202_vm4, %v329_v26, %v348_v32  ;;  %v633_v11 = vsel %vm196_vm1, %v604_v27, %v632_v52  ;;  %2297 = vset.pattern.permute.xlu1 %v2430_v44  ;;  %2296 = vset.pattern.permute.xlu0 %v2430_v44 }
 0x118   :  { %v2695_v30 = vpop.xlane.xlu1 %537  ;;  %v342_v55 = vsel %vm202_vm4, %v297_v12, %v341_v40  ;;  %v634_v63 = vsel %vm198_vm2, %v608_v29, %v633_v11 }
 0x119   :  { %v2697_v54 = vpop.xlane.xlu0 %521  ;;  %v612_v28 = vrot.slane %v2695_v30, %v2556_v37  ;;  %v626_v30 = vsel %vm196_vm1, %v572_v31, %v625_v35 }
 0x11a   :  { %v580_v38 = vrot.slane %v2697_v54, %v2556_v37 }
 0x11b   :  { %v635_v4 = vsel %vm200_vm3, %v612_v28, %v634_v63 }
 0x11c   :  { %v255_v47 = vpop.xlane.xlu1 %254 }
 0x11d   :  { %v239_v51 = vpop.xlane.xlu0 %238  ;;  %v333_v22 = vrot.slane %v255_v47, %v2556_v37  ;;  %v576_v47 = vrot.slane %v2691_v45, %v2556_v37 }
 0x11e   :  { %v301_v48 = vrot.slane %v239_v51, %v2556_v37 }
 0x11f   :  { %v350_v46 = vsel %vm204_vm5, %v333_v22, %v349_v49  ;;  %v627_v3 = vsel %vm198_vm2, %v576_v47, %v626_v30 }
 0x120   :  { %v540_v61 = vpop.xlane.xlu1 %539  ;;  %v343_v17 = vsel %vm204_vm5, %v301_v48, %v342_v55  ;;  %v628_v19 = vsel %vm200_vm3, %v580_v38, %v627_v3 }
 0x121   :  { %v524_v20 = vpop.xlane.xlu0 %523  ;;  %v616_v45 = vrot.slane %v540_v61, %v2556_v37 }
 0x122   :  { %v584_v9 = vrot.slane %v524_v20, %v2556_v37 }
 0x123   :  { %v636_v43 = vsel %vm202_vm4, %v616_v45, %v635_v4 }
 0x124   :  { %v257_v33 = vpop.xlane.xlu1 %256  ;;  %v629_v25 = vsel %vm202_vm4, %v584_v9, %v628_v19 }
 0x125   :  { %v241_v41 = vpop.xlane.xlu0 %240  ;;  %v337_v50 = vrot.slane %v257_v33, %v2556_v37 }
 0x126   :  { %v305_v53 = vrot.slane %v241_v41, %v2556_v37 }
 0x127   :  { %v351_v51 = vsel %vm206_vm6, %v337_v50, %v350_v46 }
 0x128   :  { %v344_v56 = vsel %vm206_vm6, %v305_v53, %v343_v17  ;;  %v542_v58 = vpop.xlane.xlu1 %541  ;;  %v357_v57 = vsel %vm217_vm7, %v351_v51, -inf }
 0x129   :  { %v526_v59 = vpop.xlane.xlu0 %525  ;;  %v354_v60 = vsel %vm217_vm7, %v344_v56, -inf  ;;  %358 = vmax.xlane.f32.xlu1 %v357_v57  ;;  %v620_v54 = vrot.slane %v542_v58, %v2556_v37  ;;  %v60_v57 = vld [vmem:[%s3138_s1 + $0x10] sm:$0xff] }
 0x12a   :  { %355 = vmax.xlane.f32.xlu0 %v354_v60  ;;  %v588_v62 = vrot.slane %v526_v59, %v2556_v37  ;;  %v59_v59 = vld [vmem:[%s3138_s1 + $0x8] sm:$0xff]  ;;  %v2431_v60 = vmov 1  }
 0x12b   :  { %v637_v36 = vsel %vm204_vm5, %v620_v54, %v636_v43 }
 0x12c   :  { %v544_v61 = vpop.xlane.xlu1 %543  ;;  %v630_v39 = vsel %vm204_vm5, %v588_v62, %v629_v25 }
 0x12d   :  { %v528_v20 = vpop.xlane.xlu0 %527  ;;  %v624_v26 = vrot.slane %v544_v61, %v2556_v37  ;;  %v61_v61 = vld [vmem:[%s3138_s1 + $0x18] sm:$0xff] }
 0x12e   :  { %v592_v12 = vrot.slane %v528_v20, %v2556_v37  ;;  %v58_v37 = vld [vmem:[%s3138_s1] sm:$0xff]  ;;  %s2434_s1 = smov [#allocation2]  }
 0x12f   :  { %v638_v22 = vsel %vm206_vm6, %v624_v26, %v637_v36  ;;  %2256 = vmatprep.mubr.msk.f32.mxu1 %vm666_vm8, %v58_v37  ;;  %s51_s22 = sshll.u32 %s2434_s1, 4  ;;  %s52_s22 = int_to_ptr.vmem [resolvable:$true] %s51_s22 }
 0x130   :  { %v631_v48 = vsel %vm206_vm6, %v592_v12, %v630_v39  ;;  %v644_v35 = vsel %vm217_vm7, %v638_v22, -inf }
 0x131   :  { %v641_v18 = vsel %vm217_vm7, %v631_v48, -inf  ;;  %645 = vmax.xlane.f32.xlu1 %v644_v35 }
 0x132   :  { %642 = vmax.xlane.f32.xlu0 %v641_v18 }
 0x142   :  { %663 = vperm.xlu1 %2297, %v63_v24  }
 0x146   :  { %2298 = vset.pattern.permute.xlu1 %v2431_v60 }
 0x147   :  { %755 = vperm.xlu1 %2298, %v62_v42  }
 0x148   :  { %658 = vperm.xlu0 %2296, %v62_v42  }
 0x14b   :  { %759 = vperm.xlu1 %2298, %v63_v24  }
 0x14c   :  { %2300 = vset.pattern.permute.xlu0 %v2431_v60 }
 0x14f   :  { %2299 = vset.pattern.permute.xlu1 %v2430_v44 }
 0x196   :  { %v223_v32 = vpop.xlane.xlu1 %222 }
 0x197   :  { %v220_v40 = vpop.xlane.xlu0 %219  ;;  %v225_v27 = vmul.f32 0.0009765625, %v223_v32 }
 0x198   :  { %v224_v31 = vmul.f32 0.0009765625, %v220_v40 }
 0x19e   :  { %v510_v33 = vpop.xlane.xlu1 %509 }
 0x19f   :  { %v507_v41 = vpop.xlane.xlu0 %506  ;;  %v512_v49 = vmul.f32 0.0009765625, %v510_v33 }
 0x1a0   :  { %v511_v55 = vmul.f32 0.0009765625, %v507_v41 }
 0x1a1   :  { %v649_v46 = vsel %vm647_vm9, %v225_v27, %v512_v49  ;;  %v2433_v49 = vmov 1966171168  }
 0x1a2   :  { %v648_v17 = vsel %vm647_vm9, %v224_v31, %v511_v55  ;;  %v867_v55 = vunpack.c.l.s4 %v2433_v49 }
 0x1b6   :  { %v359_v50 = vpop.xlane.xlu1 %358 }
 0x1b7   :  { %v356_v53 = vpop.xlane.xlu0 %355  ;;  %v652_v29 = vsel %vm650_vm10, %v649_v46, %v359_v50  ;;  %v868_v50 = vunpack.c.0.s8 %v867_v55 }
 0x1b8   :  { %v651_v47 = vsel %vm650_vm10, %v648_v17, %v356_v53 }
 0x1b9   :  { %v871_v53 = vsub.s32 %v868_v50, %v2551_v34 }
 0x1be   :  { %v646_v51 = vpop.xlane.xlu1 %645 }
 0x1bf   :  { %v643_v56 = vpop.xlane.xlu0 %642  ;;  %v655_v28 = vsel %vm653_vm11, %v652_v29, %v646_v51 }
 0x1c0   :  { %v654_v38 = vsel %vm653_vm11, %v651_v47, %v643_v56  ;;  %v2818_v47 = vsub.s32 0, %v2551_v34 }
 0x1c1   :  { %v2266_v58 = vpack.c.bf16 %v655_v28, %v654_v38 }
 0x1c2   :  { %v664_v52 = vpop.permute.xlu1 %663 }
 0x1c3   :  { %2267 = vmatprep.subr.bf16.mxu1 %v2266_v58 }
 0x1c4   :  { %2269 = vmatpush3.bf16.msra.mxu1 %v2266_v58 }
 0x1c6   :  { %v756_v20 = vpop.permute.xlu1 %755 }
 0x1c7   :  { %2257 = vmatmul.mubr.msk.f32.vlgmr.msra.gmra.mrb[0].mxu1 %vm666_vm8, %v59_v59  ;;  %v659_v45 = vpop.permute.xlu0 %658 }
 0x1c8   :  { %2263 = vmatprep.mubr.msk.f32.mxu1 %vm666_vm8, %v60_v57 }
 0x1ca   :  { %v760_v12 = vpop.permute.xlu1 %759 }
 0x29a   :  { %v2258_v9 = vpop.f32.mrb[0].mxu1 }
 0x29b   :  { %v745_v11 = vadd.f32 %v2258_v9, %v664_v52  ;;  %v739_v30 = vpop.f32.mrb[1].mxu1 }
 0x29c   :  { %v740_v54 = vadd.f32 %v739_v30, %v659_v45 }
 0x29d   :  { %vm749_vm12 = vcmp.ge.f32.partialorder %v745_v11, 0.0  ;;  %v751_v62 = vmul.f32 0.01, %v745_v11 }
 0x29e   :  { %vm748_vm13 = vcmp.ge.f32.partialorder %v740_v54, 0.0  ;;  %v750_v63 = vmul.f32 0.01, %v740_v54 }
 0x29f   :  { %v753_v3 = vsel %vm749_vm12, %v745_v11, %v751_v62 }
 0x2a0   :  { %v752_v4 = vsel %vm748_vm13, %v740_v54, %v750_v63 }
 0x2a1   :  { %v2270_v19 = vpack.c.bf16 %v753_v3, %v752_v4 }
 0x2a3   :  { %2271 = vmatprep.subr.bf16.mxu1 %v2270_v19 }
 0x2a4   :  { %2273 = vmatpush3.bf16.msra.mxu1 %v2270_v19 }
 0x2a7   :  { %2264 = vmatmul.mubr.msk.f32.vlgmr.msra.gmra.mrb[2].mxu1 %vm666_vm8, %v61_v61 }
 0x37a   :  { %v2265_v43 = vpop.f32.mrb[2].mxu1 }
 0x37b   :  { %v834_v25 = vpop.f32.mrb[3].mxu1  ;;  %v840_v36 = vadd.f32 %v2265_v43, %v760_v12 }
 0x37c   :  { %v835_v26 = vadd.f32 %v834_v25, %v756_v20 }
 0x37e   :  { %845 = vrot.lane.b32.xlu1 %v835_v26, %s2432_s21 }
 0x382   :  { %847 = vrot.lane.b32.xlu1 %v840_v36, %s2432_s21 }
 0x3f0   :  { %v846_v39 = vpop.permute.xlu1 %845 }
 0x3f1   :  { %v851_v22 = vadd.f32 %v846_v39, %v835_v26 }
 0x3f3   :  { %v853_v48 = vsub.f32 0.0, %v851_v22 }
 0x3f4   :  { %v848_v35 = vpop.permute.xlu1 %847 }
 0x3f5   :  { %v855_v18 = vmul.f32 1.442695, %v853_v48  ;;  %v852_v37 = vadd.f32 %v848_v35, %v840_v36 }
 0x3f7   :  { %2314 = vpow2.f32 %v855_v18  ;;  %v854_v24 = vsub.f32 0.0, %v852_v37 }
 0x3f9   :  { %v857_v42 = vmul.f32 1.442695, %v854_v24 }
 0x3fb   :  { %2316 = vpow2.f32 %v857_v42 }
 0x401   :  { %v2315_v32 = vpop.eup %2314 }
 0x402   :  { %v859_v40 = vadd.f32 1.0, %v2315_v32 }
 0x404   :  { %2318 = vrcp.f32 %v859_v40 }
 0x405   :  { %v2317_v33 = vpop.eup %2316 }
 0x406   :  { %v860_v41 = vadd.f32 1.0, %v2317_v33 }
 0x408   :  { %2320 = vrcp.f32 %v860_v41 }
 0x40e   :  { %v2319_v27 = vpop.eup %2318 }
 0x40f   :  { %v872_v17 = vrot.slane %v2319_v27, %v871_v53  ;;  %v865_v52 = vcombine.high %v2319_v27, %v2319_v27 }
 0x411   :  { %v888_v56 = vrot.slane %v872_v17, %v871_v53  ;;  %v880_v57 = vcombine.high %v872_v17, %v872_v17  ;;  %v879_v54 = vrot.slane %v865_v52, %v871_v53 }
 0x412   :  { %v2321_v31 = vpop.eup %2320 }
 0x413   :  { %v921_v46 = vrot.slane %v2321_v31, %v871_v53  ;;  %v966_v38 = vrot.slane %v888_v56, %v2818_v47  ;;  %v914_v11 = vcombine.high %v2321_v31, %v2321_v31  ;;  %v902_v30 = vrot.slane %v880_v57, %v871_v53 }
 0x414   :  { %v881_v4 = vcombine.high %v879_v54, %v879_v54  ;;  %v910_v12 = vcombine.high %v888_v56, %v888_v56  ;;  %v895_v39 = vrot.slane %v879_v54, %v871_v53 }
 0x415   :  { %v937_v29 = vrot.slane %v921_v46, %v871_v53  ;;  %v929_v28 = vcombine.high %v921_v46, %v921_v46  ;;  %v928_v63 = vrot.slane %v914_v11, %v871_v53  ;;  %v912_v3 = vcombine.high %v902_v30, %v902_v30 }
 0x416   :  { %v909_v20 = vrot.slane %v881_v4, %v871_v53  ;;  %v970_v26 = vrot.slane %v902_v30, %v2818_v47  ;;  %v974_v36 = vrot.slane %v910_v12, %v2818_v47  ;;  %v982_v35 = vrot.slane %v895_v39, %v2818_v47 }
 0x417   :  { %v998_v51 = vrot.slane %v937_v29, %v2818_v47  ;;  %v951_v58 = vrot.slane %v929_v28, %v871_v53  ;;  %v959_v59 = vcombine.high %v937_v29, %v937_v29  ;;  %v944_v19 = vrot.slane %v928_v63, %v871_v53 }
 0x418   :  { %v978_v61 = vrot.slane %v912_v3, %v2818_v47  ;;  %v986_v25 = vrot.slane %v909_v20, %v2818_v47  ;;  %v913_v22 = vcombine.high %v909_v20, %v909_v20  ;;  %v930_v48 = vcombine.high %v928_v63, %v928_v63 }
 0x419   :  { %1214 = vperm.xlu0 %2300, %v998_v51   ;;  %1060 = vperm.xlu1 %2299, %v998_v51   ;;  %v1002_v45 = vrot.slane %v951_v58, %v2818_v47  ;;  %v1006_v9 = vrot.slane %v959_v59, %v2818_v47  ;;  %v961_v34 = vcombine.high %v951_v58, %v951_v58 }
 0x41a   :  { %v1014_v43 = vrot.slane %v944_v19, %v2818_v47  ;;  %v994_v18 = vrot.slane %v913_v22, %v2818_v47  ;;  %v958_v37 = vrot.slane %v930_v48, %v871_v53  ;;  %v911_v40 = vcombine.high %v895_v39, %v895_v39 }
 0x41b   :  { %v1010_v62 = vrot.slane %v961_v34, %v2818_v47  ;;  %v960_v41 = vcombine.high %v944_v19, %v944_v19 }
 0x41c   :  { %v1018_v24 = vrot.slane %v958_v37, %v2818_v47  ;;  %v962_v42 = vcombine.high %v958_v37, %v958_v37  ;;  %v990_v33 = vrot.slane %v911_v40, %v2818_v47 }
 0x41d   :  { %1182 = vperm.xlu0 %2300, %v966_v38   ;;  %1028 = vperm.xlu1 %2299, %v966_v38   ;;  %v1022_v49 = vrot.slane %v960_v41, %v2818_v47 }
 0x41e   :  { %v1026_v32 = vrot.slane %v962_v42, %v2818_v47 }
 0x421   :  { %2302 = vset.pattern.permute.xlu0 %v2430_v44  ;;  %1064 = vperm.xlu1 %2299, %v1002_v45  }
 0x422   :  { %1068 = vperm.xlu0 %2302, %v1006_v9  }
 0x425   :  { %2301 = vset.pattern.permute.xlu1 %v2431_v60 }
 0x426   :  { %2306 = vset.pattern.permute.xlu0 %v2431_v60  ;;  %1218 = vperm.xlu1 %2301, %v1002_v45  }
 0x427   :  { %1226 = vperm.xlu0 %2306, %v1010_v62  }
 0x42a   :  { %1222 = vperm.xlu1 %2301, %v1006_v9  }
 0x42b   :  { %2307 = vset.pattern.permute.xlu0 %v2430_v44 }
 0x42c   :  { %1040 = vperm.xlu0 %2307, %v978_v61  }
 0x42e   :  { %2303 = vset.pattern.permute.xlu1 %v2430_v44 }
 0x42f   :  { %1076 = vperm.xlu1 %2303, %v1014_v43  }
 0x430   :  { %1048 = vperm.xlu0 %2307, %v986_v25  }
 0x433   :  { %1032 = vperm.xlu1 %2303, %v970_v26  }
 0x434   :  { %2308 = vset.pattern.permute.xlu0 %v2431_v60 }
 0x435   :  { %1194 = vperm.xlu0 %2308, %v978_v61  }
 0x437   :  { %1036 = vperm.xlu1 %2303, %v974_v36  }
 0x439   :  { %1202 = vperm.xlu0 %2308, %v986_v25  }
 0x43b   :  { %1044 = vperm.xlu1 %2303, %v982_v35  }
 0x43d   :  { %2310 = vset.pattern.permute.xlu0 %v2430_v44 }
 0x43e   :  { %1056 = vperm.xlu0 %2310, %v994_v18  }
 0x43f   :  { %2304 = vset.pattern.permute.xlu1 %v2431_v60 }
 0x440   :  { %1186 = vperm.xlu1 %2304, %v970_v26  }
 0x442   :  { %1080 = vperm.xlu0 %2310, %v1018_v24  }
 0x444   :  { %1190 = vperm.xlu1 %2304, %v974_v36  }
 0x446   :  { %1088 = vperm.xlu0 %2310, %v1026_v32  }
 0x448   :  { %1198 = vperm.xlu1 %2304, %v982_v35  }
 0x44a   :  { %2313 = vset.pattern.permute.xlu0 %v2431_v60 }
 0x44b   :  { %1242 = vperm.xlu0 %2313, %v1026_v32  }
 0x44c   :  { %2305 = vset.pattern.permute.xlu1 %v2430_v44 }
 0x44d   :  { %1072 = vperm.xlu1 %2305, %v1010_v62  }
 0x451   :  { %1052 = vperm.xlu1 %2305, %v990_v33  }
 0x455   :  { %2309 = vset.pattern.permute.xlu1 %v2431_v60 }
 0x456   :  { %1206 = vperm.xlu1 %2309, %v990_v33  }
 0x45a   :  { %1210 = vperm.xlu1 %2309, %v994_v18  }
 0x45e   :  { %1230 = vperm.xlu1 %2309, %v1014_v43  }
 0x462   :  { %1234 = vperm.xlu1 %2309, %v1018_v24  }
 0x466   :  { %2311 = vset.pattern.permute.xlu1 %v2430_v44 }
 0x467   :  { %1084 = vperm.xlu1 %2311, %v1022_v49  }
 0x46b   :  { %2312 = vset.pattern.permute.xlu1 %v2431_v60 }
 0x46c   :  { %1238 = vperm.xlu1 %2312, %v1022_v49  }
 0x46d   :  { %2383 = shalt.err (!%p2380_p1)  }
 0x46e   :  { %s2384_s5 = scalar_lea.vmem %s52_s22, 14336  ;;  %p2389_p3 = scmp.lt.s32.totalorder %s52_s22, %s52_s22 }
 0x46f   :  { %p2385_p2 = scmp.ne.s32.totalorder %s52_s22, %s2384_s5  ;;  %p2390_p4 = scmp.lt.s32.totalorder %s2384_s5, %s2384_s5 }
 0x471   :  { %p2391_p5 = por %p2390_p4, %p2389_p3 }
 0x473   :  { %p2392_p6 = pnand %p2391_p5, %p2385_p2 }
 0x475   :  { %2395 = shalt.err (!%p2392_p6)  }
 0x476   :  { %54 = dma.hbm_to_vmem [thread:$0]  %s3140_s3, 14336, %s52_s22, [#allocation3]  ;;  %v2322_v59 = vld [vmem:[#allocation8 + $0x8] sm:$0xff]  ;;  %v3150_v30 = vld [vmem:[#allocation18_spill] sm:$0xff]  ;;  %v3151_v4 = vld [vmem:[#allocation20_spill] sm:$0xff]  ;;  %vm1160_vm14 = vcmask 1042432  }
 0x477   :  { %v1166_v63 = vld [vmem:[#allocation8 + $0x88] sm:$0xff]  ;;  %v1167_v25 = vld [vmem:[#allocation8 + $0x90] sm:$0xff]  ;;  %v1169_v42 = vld [vmem:[#allocation8 + $0xa0] sm:$0xff] }
 0x478   :  { %v2324_v12 = vld [vmem:[#allocation8 + $0x68] sm:$0xff] }
 0x479   :  { %v3152_v40 = vld [vmem:[#allocation19_spill] sm:$0xff] }
 0x498   :  { %v1215_v44 = vpop.permute.xlu0 %1214  ;;  %v1061_v60 = vpop.permute.xlu1 %1060 }
 0x499   :  { %v2862_v55 = vmul.f32 %v1215_v44, %v2493_v7  ;;  %v2865_v50 = vmul.f32 %v1061_v60, %v2479_v0 }
 0x49b   :  { %1270 = vst [vmem:[#allocation9 + $0xc0] sm:$0xff] %v2862_v55  ;;  %1115 = vst [vmem:[#allocation9 + $0x40] sm:$0xff] %v2865_v50 }
 0x49c   :  { %v1183_v53 = vpop.permute.xlu0 %1182  ;;  %v1029_v27 = vpop.permute.xlu1 %1028 }
 0x49d   :  { %v2870_v31 = vmul.f32 %v1183_v53, %v2488_v5  ;;  %v1091_v46 = vmul.f32 %v1029_v27, %v2481_v1  ;;  %v3153_v27 = vld [vmem:[#allocation21_spill] sm:$0xff] }
 0x49f   :  { %1262 = vst [vmem:[#allocation9 + $0x80] sm:$0xff] %v2870_v31  ;;  %1107 = vst [vmem:[#allocation9] sm:$0xff] %v1091_v46 }
 0x4a0   :  { %v1065_v17 = vpop.permute.xlu1 %1064 }
 0x4a1   :  { %v2875_v7 = vmul.f32 %v1065_v17, %v2485_v2  ;;  %v1069_v0 = vpop.permute.xlu0 %1068 }
 0x4a2   :  { %v2878_v29 = vmul.f32 %v1069_v0, %v2497_v8 }
 0x4a3   :  { %1116 = vst [vmem:[#allocation9 + $0x48] sm:$0xff] %v2875_v7 }
 0x4a4   :  { %1117 = vst [vmem:[#allocation9 + $0x50] sm:$0xff] %v2878_v29 }
 0x4a5   :  { %v1219_v47 = vpop.permute.xlu1 %1218 }
 0x4a6   :  { %v2883_v5 = vmul.f32 %v1219_v47, %v2491_v6  ;;  %v1227_v1 = vpop.permute.xlu0 %1226 }
 0x4a7   :  { %v2886_v51 = vmul.f32 %v1227_v1, %v2506_v14  ;;  %v2325_v1 = vld [vmem:[#allocation8 + $0x58] sm:$0xff] }
 0x4a8   :  { %1271 = vst [vmem:[#allocation9 + $0xc8] sm:$0xff] %v2883_v5 }
 0x4a9   :  { %1273 = vst [vmem:[#allocation9 + $0xd8] sm:$0xff] %v2886_v51  ;;  %v1223_v2 = vpop.permute.xlu1 %1222 }
 0x4aa   :  { %v2891_v8 = vmul.f32 %v1223_v2, %v2500_v10 }
 0x4ab   :  { %v1041_v56 = vpop.permute.xlu0 %1040 }
 0x4ac   :  { %1272 = vst [vmem:[#allocation9 + $0xd0] sm:$0xff] %v2891_v8  ;;  %v2895_v28 = vmul.f32 %v1041_v56, %v2503_v13 }
 0x4ae   :  { %1110 = vst [vmem:[#allocation9 + $0x18] sm:$0xff] %v2895_v28  ;;  %v1077_v6 = vpop.permute.xlu1 %1076 }
 0x4af   :  { %v2899_v14 = vmul.f32 %v1077_v6, %v2512_v16  ;;  %v1049_v38 = vpop.permute.xlu0 %1048  ;;  %v2323_v16 = vld [vmem:[#allocation8 + $0x10] sm:$0xff] }
 0x4b0   :  { %v2902_v58 = vmul.f32 %v1049_v38, %v2521_v21 }
 0x4b1   :  { %1119 = vst [vmem:[#allocation9 + $0x60] sm:$0xff] %v2899_v14 }
 0x4b2   :  { %1112 = vst [vmem:[#allocation9 + $0x28] sm:$0xff] %v2902_v58  ;;  %v1033_v10 = vpop.permute.xlu1 %1032 }
 0x4b3   :  { %v1092_v57 = vmul.f32 %v2322_v59, %v1033_v10  ;;  %v2326_v10 = vld [vmem:[#allocation8 + $0x30] sm:$0xff] }
 0x4b4   :  { %v1195_v52 = vpop.permute.xlu0 %1194 }
 0x4b5   :  { %1108 = vst [vmem:[#allocation9 + $0x8] sm:$0xff] %v1092_v57  ;;  %v2907_v13 = vmul.f32 %v1195_v52, %v2508_v15  ;;  %v1124_v3 = vmax.f32 %v1092_v57, %v2902_v58  ;;  %v1138_v39 = vadd.f32 %v1092_v57, %v1091_v46  ;;  %v1171_v52 = vld [vmem:[#allocation8 + $0xb0] sm:$0xff] }
 0x4b6   :  { %v1037_v45 = vpop.permute.xlu1 %1036 }
 0x4b7   :  { %1265 = vst [vmem:[#allocation9 + $0x98] sm:$0xff] %v2907_v13  ;;  %v2910_v9 = vmul.f32 %v2323_v16, %v1037_v45  ;;  %v1128_v26 = vmax.f32 %v1124_v3, %v2875_v7 }
 0x4b8   :  { %v1203_v21 = vpop.permute.xlu0 %1202 }
 0x4b9   :  { %1109 = vst [vmem:[#allocation9 + $0x10] sm:$0xff] %v2910_v9  ;;  %v2914_v34 = vmul.f32 %v1203_v21, %v2525_v23  ;;  %v1139_v37 = vadd.f32 %v1138_v39, %v2910_v9  ;;  %v1178_v39 = vld [vmem:[#allocation8 + $0xe8] sm:$0xff] }
 0x4ba   :  { %v1045_v11 = vpop.permute.xlu1 %1044 }
 0x4bb   :  { %1267 = vst [vmem:[#allocation9 + $0xa8] sm:$0xff] %v2914_v34  ;;  %v1095_v54 = vmul.f32 %v1045_v11, %v3150_v30  ;;  %v1140_v44 = vadd.f32 %v1139_v37, %v2895_v28 }
 0x4bd   :  { %1111 = vst [vmem:[#allocation9 + $0x20] sm:$0xff] %v1095_v54  ;;  %v1123_v15 = vmax.f32 %v1091_v46, %v1095_v54  ;;  %v1057_v62 = vpop.permute.xlu0 %1056  ;;  %v1141_v47 = vadd.f32 %v1140_v44, %v1095_v54  ;;  %v1172_v54 = vld [vmem:[#allocation8 + $0xb8] sm:$0xff] }
 0x4be   :  { %v2920_v19 = vmul.f32 %v1057_v62, %v3151_v4  ;;  %v1177_v4 = vld [vmem:[#allocation8 + $0xe0] sm:$0xff] }
 0x4bf   :  { %v1127_v61 = vmax.f32 %v1123_v15, %v2865_v50  ;;  %v1187_v20 = vpop.permute.xlu1 %1186  ;;  %v1142_v38 = vadd.f32 %v1141_v47, %v2902_v58 }
 0x4c0   :  { %1114 = vst [vmem:[#allocation9 + $0x38] sm:$0xff] %v2920_v19  ;;  %v2924_v23 = vmul.f32 %v1187_v20, %v1166_v63 }
 0x4c1   :  { %v1081_v43 = vpop.permute.xlu0 %1080  ;;  %v1131_v48 = vmax.f32 %v1127_v61, %v2899_v14 }
 0x4c2   :  { %1263 = vst [vmem:[#allocation9 + $0x88] sm:$0xff] %v2924_v23  ;;  %v2928_v36 = vmul.f32 %v2324_v12, %v1081_v43  ;;  %v1293_v60 = vadd.f32 %v2924_v23, %v2870_v31 }
 0x4c3   :  { %v1191_v22 = vpop.permute.xlu1 %1190 }
 0x4c4   :  { %1120 = vst [vmem:[#allocation9 + $0x68] sm:$0xff] %v2928_v36  ;;  %v1132_v35 = vmax.f32 %v1128_v26, %v2928_v36  ;;  %v2933_v18 = vmul.f32 %v1191_v22, %v1167_v25  ;;  %v1279_v25 = vmax.f32 %v2924_v23, %v2914_v34 }
 0x4c5   :  { %v1089_v24 = vpop.permute.xlu0 %1088 }
 0x4c6   :  { %v2936_v32 = vmax.f32 %v1131_v48, %v1132_v35  ;;  %1264 = vst [vmem:[#allocation9 + $0x90] sm:$0xff] %v2933_v18  ;;  %v2940_v33 = vmul.f32 %v1089_v24, %v3152_v40  ;;  %v1294_v17 = vadd.f32 %v1293_v60, %v2933_v18  ;;  %v1283_v24 = vmax.f32 %v1279_v25, %v2883_v5 }
 0x4c7   :  { %v1199_v41 = vpop.permute.xlu1 %1198 }
 0x4c8   :  { %1122 = vst [vmem:[#allocation9 + $0x78] sm:$0xff] %v2940_v33  ;;  %v1249_v49 = vmul.f32 %v1199_v41, %v1169_v42  ;;  %v1295_v56 = vadd.f32 %v1294_v17, %v2907_v13 }
 0x4ca   :  { %1266 = vst [vmem:[#allocation9 + $0xa0] sm:$0xff] %v1249_v49  ;;  %v1243_v53 = vpop.permute.xlu0 %1242  ;;  %v1296_v45 = vadd.f32 %v1295_v56, %v1249_v49 }
 0x4cb   :  { %v2947_v46 = vmul.f32 %v1243_v53, %v3153_v27  ;;  %v2327_v27 = vld [vmem:[#allocation8 + $0x70] sm:$0xff] }
 0x4cc   :  { %v1073_v0 = vpop.permute.xlu1 %1072  ;;  %v1297_v15 = vadd.f32 %v1296_v45, %v2914_v34  ;;  %v1126_v34 = vmax.f32 %v2895_v28, %v2920_v19 }
 0x4cd   :  { %1277 = vst [vmem:[#allocation9 + $0xf8] sm:$0xff] %v2947_v46  ;;  %v1102_v2 = vmul.f32 %v2325_v1, %v1073_v0  ;;  %v1179_v1 = vld [vmem:[#allocation8 + $0xf0] sm:$0xff] }
 0x4cf   :  { %1118 = vst [vmem:[#allocation9 + $0x58] sm:$0xff] %v1102_v2  ;;  %v1130_v44 = vmax.f32 %v1126_v34, %v1102_v2 }
 0x4d0   :  { %v1053_v6 = vpop.permute.xlu1 %1052 }
 0x4d1   :  { %v1097_v59 = vmul.f32 %v2326_v10, %v1053_v6 }
 0x4d3   :  { %1113 = vst [vmem:[#allocation9 + $0x30] sm:$0xff] %v1097_v59  ;;  %v1143_v57 = vadd.f32 %v1142_v38, %v1097_v59 }
 0x4d5   :  { %v1144_v16 = vadd.f32 %v1143_v57, %v2920_v19  ;;  %v1207_v21 = vpop.permute.xlu1 %1206 }
 0x4d6   :  { %v1251_v11 = vmul.f32 %v1207_v21, %v1171_v52 }
 0x4d7   :  { %v1145_v30 = vadd.f32 %v1144_v16, %v2865_v50  ;;  %v1278_v50 = vmax.f32 %v2870_v31, %v1249_v49  ;;  %v1125_v31 = vmax.f32 %v2910_v9, %v1097_v59 }
 0x4d8   :  { %1268 = vst [vmem:[#allocation9 + $0xb0] sm:$0xff] %v1251_v11  ;;  %v1298_v58 = vadd.f32 %v1297_v15, %v1251_v11  ;;  %v1280_v9 = vmax.f32 %v2933_v18, %v1251_v11 }
 0x4d9   :  { %v1146_v62 = vadd.f32 %v1145_v30, %v2875_v7  ;;  %v1211_v63 = vpop.permute.xlu1 %1210  ;;  %v1282_v35 = vmax.f32 %v1278_v50, %v2862_v55 }
 0x4da   :  { %v1252_v3 = vmul.f32 %v1211_v63, %v1172_v54  ;;  %v1284_v38 = vmax.f32 %v1280_v9, %v2891_v8 }
 0x4db   :  { %v1147_v61 = vadd.f32 %v1146_v62, %v2878_v29 }
 0x4dc   :  { %1269 = vst [vmem:[#allocation9 + $0xb8] sm:$0xff] %v1252_v3  ;;  %v1299_v20 = vadd.f32 %v1298_v58, %v1252_v3 }
 0x4dd   :  { %v1231_v43 = vpop.permute.xlu1 %1230  ;;  %v1148_v22 = vadd.f32 %v1147_v61, %v1102_v2 }
 0x4de   :  { %v1300_v26 = vadd.f32 %v1299_v20, %v2862_v55  ;;  %v1257_v12 = vmul.f32 %v1231_v43, %v1177_v4  ;;  %v1281_v55 = vmax.f32 %v2907_v13, %v1252_v3 }
 0x4df   :  { %v1149_v23 = vadd.f32 %v1148_v22, %v2899_v14  ;;  %v1134_v14 = vmax.f32 %v1130_v44, %v2940_v33 }
 0x4e0   :  { %v1301_v7 = vadd.f32 %v1300_v26, %v2883_v5  ;;  %1274 = vst [vmem:[#allocation9 + $0xe0] sm:$0xff] %v1257_v12  ;;  %v1286_v41 = vmax.f32 %v1282_v35, %v1257_v12  ;;  %v1129_v5 = vmax.f32 %v1125_v31, %v2878_v29  ;;  %v1285_v2 = vmax.f32 %v1281_v55, %v2886_v51 }
 0x4e1   :  { %v1235_v48 = vpop.permute.xlu1 %1234  ;;  %v1150_v28 = vadd.f32 %v1149_v23, %v2928_v36 }
 0x4e2   :  { %v1302_v37 = vadd.f32 %v1301_v7, %v2891_v8  ;;  %v1258_v42 = vmul.f32 %v1235_v48, %v1178_v39  ;;  %v1289_v57 = vmax.f32 %v1285_v2, %v2947_v46 }
 0x4e4   :  { %v1303_v40 = vadd.f32 %v1302_v37, %v2886_v51  ;;  %1275 = vst [vmem:[#allocation9 + $0xe8] sm:$0xff] %v1258_v42  ;;  %v1287_v49 = vmax.f32 %v1283_v24, %v1258_v42 }
 0x4e6   :  { %v1290_v60 = vmax.f32 %v1286_v41, %v1287_v49  ;;  %v1085_v53 = vpop.permute.xlu1 %1084  ;;  %v1304_v19 = vadd.f32 %v1303_v40, %v1257_v12 }
 0x4e7   :  { %v1105_v17 = vmul.f32 %v2327_v27, %v1085_v53 }
 0x4e8   :  { %v1305_v29 = vadd.f32 %v1304_v19, %v1258_v42 }
 0x4e9   :  { %1121 = vst [vmem:[#allocation9 + $0x70] sm:$0xff] %v1105_v17  ;;  %v1133_v0 = vmax.f32 %v1129_v5, %v1105_v17  ;;  %v1151_v47 = vadd.f32 %v1150_v28, %v1105_v17 }
 0x4eb   :  { %v1136_v13 = vmax.f32 %v1133_v0, %v1134_v14  ;;  %v1152_v56 = vadd.f32 %v1151_v47, %v2940_v33  ;;  %v1239_v6 = vpop.permute.xlu1 %1238 }
 0x4ec   :  { %v1259_v10 = vmul.f32 %v1239_v6, %v1179_v1 }
 0x4ed   :  { %v1137_v36 = vmax.f32 %v2936_v32, %v1136_v13  ;;  %v1153_v18 = vmul.f32 0.0625, %v1152_v56 }
 0x4ee   :  { %1276 = vst [vmem:[#allocation9 + $0xf0] sm:$0xff] %v1259_v10  ;;  %v1288_v59 = vmax.f32 %v1284_v38, %v1259_v10  ;;  %v1306_v52 = vadd.f32 %v1305_v29, %v1259_v10 }
 0x4ef   :  { %v2981_v45 = vrot.slane %v1137_v36, 5  ;;  %v1157_v51 = vrot.slane %v1153_v18, 5 }
 0x4f0   :  { %v1291_v16 = vmax.f32 %v1288_v59, %v1289_v57  ;;  %v1307_v33 = vadd.f32 %v1306_v52, %v2947_v46 }
 0x4f1   :  { %v2986_v21 = vsel %vm1160_vm14, 0.0, %v2981_v45  ;;  %v2989_v8 = vsel %vm1160_vm14, 0.0, %v1157_v51  ;;  %v2993_v32 = vsel %vm1160_vm14, %v2981_v45, 0.0  ;;  %v2996_v11 = vsel %vm1160_vm14, %v1157_v51, 0.0 }
 0x4f2   :  { %v1292_v30 = vmax.f32 %v1290_v60, %v1291_v16  ;;  %v1308_v54 = vmul.f32 0.0625, %v1307_v33 }
 0x4f4   :  { %v2998_v15 = vrot.slane %v1292_v30, 5  ;;  %v1312_v62 = vrot.slane %v1308_v54, 5 }
 0x4f6   :  { %v3002_v46 = vsel %vm1160_vm14, 0.0, %v2998_v15  ;;  %v3005_v63 = vsel %vm1160_vm14, 0.0, %v1312_v62  ;;  %v3009_v58 = vsel %vm1160_vm14, %v2998_v15, 0.0  ;;  %v3012_v3 = vsel %vm1160_vm14, %v1312_v62, 0.0 }
 0x4f7   :  { %2422 = dma.done.wait [#allocation3], 14336 }
 0x4f8   :  { %2423 = vsyncadd [#allocation3], 4294952960  ;;  %vm1346_vm15 = vcmask 1046528   ;;  %v1350_v4 = vrot.slane %v2989_v8, 1  ;;  %v1351_v61 = vrot.slane %v2996_v11, 1  ;;  %v1362_v20 = vrot.slane %v3005_v63, 1 }
 0x4f9   :  { %v1363_v43 = vrot.slane %v3012_v3, 1  ;;  %vm3019_vm0 = vmneg %vm1160_vm14  ;;  %v2082_v50 = vpack.c.bf16 %v1312_v62, %v1157_v51  ;;  %v1378_v22 = vld [vmem:[#allocation2 + $0xc0] sm:$0xff]  ;;  %v1379_v37 = vld [vmem:[#allocation2 + $0xc8] sm:$0xff]  ;;  %v1347_v0 = vrot.slane %v2986_v21, 1  ;;  %v1348_v47 = vrot.slane %v2993_v32, 1 }
 0x4fa   :  { %v1352_v26 = vsel %vm1346_vm15, %v1350_v4, %v1351_v61  ;;  %vm2081_vm1 = vmpackc.low %vm3019_vm0, %vm3019_vm0  ;;  %v1334_v7 = vld [vmem:[#allocation2 + $0x40] sm:$0xff]  ;;  %2098 = vmatprep.subr.bf16.mxu0 %v1378_v22  ;;  %v1335_v24 = vld [vmem:[#allocation2 + $0x48] sm:$0xff]  ;;  %v1359_v13 = vrot.slane %v3002_v46, 1  ;;  %v1360_v56 = vrot.slane %v3009_v58, 1  ;;  %v1472_v10 = vrot.slane %v2989_v8, 2 }
 0x4fb   :  { %v1364_v12 = vsel %vm1346_vm15, %v1362_v20, %v1363_v43  ;;  %2083 = vmatprep.mubr.msk.bf16.mxu1 %vm2081_vm1, %v2082_v50  ;;  %v1370_v48 = vld [vmem:[#allocation2 + $0x80] sm:$0xff]  ;;  %2120 = vmatprep.subr.bf16.mxu1 %v1334_v7  ;;  %v1371_v42 = vld [vmem:[#allocation2 + $0x88] sm:$0xff]  ;;  %v1380_v31 = vld [vmem:[#allocation2 + $0xd0] sm:$0xff]  ;;  %v1349_v38 = vsel %vm1346_vm15, %v1347_v0, %v1348_v47  ;;  %v1473_v57 = vrot.slane %v2996_v11, 2  ;;  %v1480_v52 = vrot.slane %v3005_v63, 2 }
 0x4fc   :  { %v1368_v39 = vpack.c.bf16 %v1364_v12, %v1352_v26  ;;  %v1326_v35 = vld [vmem:[#allocation2] sm:$0xff]  ;;  %2099 = vmatpush3.bf16.msra.mxu0 %v1370_v48  ;;  %v1327_v34 = vld [vmem:[#allocation2 + $0x8] sm:$0xff]  ;;  %v1336_v23 = vld [vmem:[#allocation2 + $0x50] sm:$0xff]  ;;  %v1361_v59 = vsel %vm1346_vm15, %v1359_v13, %v1360_v56  ;;  %v1481_v51 = vrot.slane %v3012_v3, 2  ;;  %v1551_v16 = vrot.slane %v2989_v8, 3 }
 0x4fd   :  { %2121 = vmatpush3.bf16.msra.mxu1 %v1326_v35  ;;  %2100 = vmatprep.subr.bf16.mxu0 %v1379_v37  ;;  %v1372_v40 = vld [vmem:[#allocation2 + $0x90] sm:$0xff]  ;;  %v1381_v49 = vld [vmem:[#allocation2 + $0xd8] sm:$0xff]  ;;  %v1382_v53 = vld [vmem:[#allocation2 + $0xe0] sm:$0xff]  ;;  %v1552_v33 = vrot.slane %v2996_v11, 3  ;;  %v1559_v30 = vrot.slane %v3005_v63, 3  ;;  %v1560_v54 = vrot.slane %v3012_v3, 3  ;;  %v1367_v61 = vpack.c.bf16 %v1361_v59, %v1349_v38 }
 0x4fe   :  { %1418 = vmatprep.mubr.bf16.mxu0 %v1368_v39  ;;  %2122 = vmatprep.subr.bf16.mxu1 %v1335_v24  ;;  %v1328_v41 = vld [vmem:[#allocation2 + $0x10] sm:$0xff]  ;;  %v1337_v44 = vld [vmem:[#allocation2 + $0x58] sm:$0xff]  ;;  %v1338_v5 = vld [vmem:[#allocation2 + $0x60] sm:$0xff]  ;;  %vm1468_vm2 = vcmask 1045504   ;;  %vm1547_vm3 = vcmask 1044480   ;;  %v2087_v20 = vpack.c.bf16 %v2998_v15, %v2981_v45  ;;  %v1477_v0 = vrot.slane %v3002_v46, 2 }
 0x4ff   :  { %v1373_v55 = vld [vmem:[#allocation2 + $0x98] sm:$0xff]  ;;  %v1374_v27 = vld [vmem:[#allocation2 + $0xa0] sm:$0xff]  ;;  %v1383_v28 = vld [vmem:[#allocation2 + $0xe8] sm:$0xff]  ;;  %v1474_v26 = vsel %vm1468_vm2, %v1472_v10, %v1473_v57  ;;  %v1482_v12 = vsel %vm1468_vm2, %v1480_v52, %v1481_v51  ;;  %v1553_v39 = vsel %vm1547_vm3, %v1551_v16, %v1552_v33  ;;  %v1561_v22 = vsel %vm1547_vm3, %v1559_v30, %v1560_v54 }
 0x500   :  { %2101 = vmatpush3.bf16.msra.mxu0 %v1371_v42  ;;  %v1329_v60 = vld [vmem:[#allocation2 + $0x18] sm:$0xff]  ;;  %v1330_v17 = vld [vmem:[#allocation2 + $0x20] sm:$0xff]  ;;  %v1339_v9 = vld [vmem:[#allocation2 + $0x68] sm:$0xff]  ;;  %v1486_v24 = vpack.c.bf16 %v1482_v12, %v1474_v26  ;;  %v1565_v45 = vpack.c.bf16 %v1561_v22, %v1553_v39  ;;  %v1478_v47 = vrot.slane %v3009_v58, 2  ;;  %v1630_v57 = vrot.slane %v2989_v8, 4 }
 0x501   :  { %2123 = vmatpush3.bf16.msra.mxu1 %v1327_v34  ;;  %2102 = vmatprep.subr.bf16.mxu0 %v1380_v31  ;;  %v1375_v19 = vld [vmem:[#allocation2 + $0xa8] sm:$0xff]  ;;  %v1384_v1 = vld [vmem:[#allocation2 + $0xf0] sm:$0xff]  ;;  %v1385_v36 = vld [vmem:[#allocation2 + $0xf8] sm:$0xff]  ;;  %v1631_v33 = vrot.slane %v2996_v11, 4  ;;  %v1638_v30 = vrot.slane %v3005_v63, 4  ;;  %v1639_v54 = vrot.slane %v3012_v3, 4 }
 0x502   :  { %2124 = vmatprep.subr.bf16.mxu1 %v1336_v23  ;;  %v1331_v14 = vld [vmem:[#allocation2 + $0x28] sm:$0xff]  ;;  %v1340_v2 = vld [vmem:[#allocation2 + $0x70] sm:$0xff]  ;;  %v1341_v18 = vld [vmem:[#allocation2 + $0x78] sm:$0xff]  ;;  %vm1626_vm4 = vcmask 1043456   ;;  %vm1783_vm5 = vcmask 1041408  }
 0x503   :  { %v1376_v6 = vld [vmem:[#allocation2 + $0xb0] sm:$0xff]  ;;  %v1377_v62 = vld [vmem:[#allocation2 + $0xb8] sm:$0xff]  ;;  %v1496_v43 = vld [vmem:[#allocation2 + $0x140] sm:$0xff] }
 0x504   :  { %2103 = vmatpush3.bf16.msra.mxu0 %v1372_v40  ;;  %v1332_v29 = vld [vmem:[#allocation2 + $0x30] sm:$0xff]  ;;  %v1333_v4 = vld [vmem:[#allocation2 + $0x38] sm:$0xff]  ;;  %v1575_v50 = vld [vmem:[#allocation2 + $0x1c0] sm:$0xff] }
 0x505   :  { %2125 = vmatpush3.bf16.msra.mxu1 %v1328_v41  ;;  %2104 = vmatprep.subr.bf16.mxu0 %v1381_v49  ;;  %v1488_v7 = vld [vmem:[#allocation2 + $0x100] sm:$0xff]  ;;  %v1497_v35 = vld [vmem:[#allocation2 + $0x148] sm:$0xff]  ;;  %v1498_v34 = vld [vmem:[#allocation2 + $0x150] sm:$0xff] }
 0x506   :  { %2126 = vmatprep.subr.bf16.mxu1 %v1337_v44  ;;  %v1567_v48 = vld [vmem:[#allocation2 + $0x180] sm:$0xff]  ;;  %v1576_v37 = vld [vmem:[#allocation2 + $0x1c8] sm:$0xff]  ;;  %v1577_v31 = vld [vmem:[#allocation2 + $0x1d0] sm:$0xff] }
 0x507   :  { %v1489_v15 = vld [vmem:[#allocation2 + $0x108] sm:$0xff]  ;;  %v1490_v23 = vld [vmem:[#allocation2 + $0x110] sm:$0xff]  ;;  %v1499_v41 = vld [vmem:[#allocation2 + $0x158] sm:$0xff] }
 0x508   :  { %2105 = vmatpush3.bf16.msra.mxu0 %v1373_v55  ;;  %v1568_v42 = vld [vmem:[#allocation2 + $0x188] sm:$0xff]  ;;  %v1569_v40 = vld [vmem:[#allocation2 + $0x190] sm:$0xff]  ;;  %v1578_v25 = vld [vmem:[#allocation2 + $0x1d8] sm:$0xff] }
 0x509   :  { %2127 = vmatpush3.bf16.msra.mxu1 %v1329_v60  ;;  %2106 = vmatprep.subr.bf16.mxu0 %v1382_v53  ;;  %v1491_v49 = vld [vmem:[#allocation2 + $0x118] sm:$0xff]  ;;  %v1500_v55 = vld [vmem:[#allocation2 + $0x160] sm:$0xff]  ;;  %v1502_v13 = vld [vmem:[#allocation2 + $0x170] sm:$0xff] }
 0x50a   :  { %2128 = vmatprep.subr.bf16.mxu1 %v1338_v5  ;;  %v1570_v44 = vld [vmem:[#allocation2 + $0x198] sm:$0xff]  ;;  %v1579_v60 = vld [vmem:[#allocation2 + $0x1e0] sm:$0xff]  ;;  %v1581_v56 = vld [vmem:[#allocation2 + $0x1f0] sm:$0xff] }
 0x50b   :  { %v1492_v53 = vld [vmem:[#allocation2 + $0x120] sm:$0xff]  ;;  %v1494_v38 = vld [vmem:[#allocation2 + $0x130] sm:$0xff]  ;;  %v1503_v52 = vld [vmem:[#allocation2 + $0x178] sm:$0xff] }
 0x50c   :  { %2107 = vmatpush3.bf16.msra.mxu0 %v1374_v27  ;;  %v1571_v5 = vld [vmem:[#allocation2 + $0x1a0] sm:$0xff]  ;;  %v1501_v27 = vld [vmem:[#allocation2 + $0x168] sm:$0xff]  ;;  %v1573_v10 = vld [vmem:[#allocation2 + $0x1b0] sm:$0xff] }
 0x50d   :  { %2129 = vmatpush3.bf16.msra.mxu1 %v1330_v17  ;;  %2108 = vmatprep.subr.bf16.mxu0 %v1383_v28  ;;  %v1580_v17 = vld [vmem:[#allocation2 + $0x1e8] sm:$0xff]  ;;  %v1469_v28 = vrot.slane %v2986_v21, 2  ;;  %v1582_v51 = vld [vmem:[#allocation2 + $0x1f8] sm:$0xff]  ;;  %v1654_v12 = vld [vmem:[#allocation2 + $0x240] sm:$0xff] }
 0x50e   :  { %2130 = vmatprep.subr.bf16.mxu1 %v1339_v9  ;;  %v1470_v9 = vrot.slane %v2993_v32, 2  ;;  %v1732_v22 = vld [vmem:[#allocation2 + $0x2c0] sm:$0xff] }
 0x510   :  { %2109 = vmatpush3.bf16.msra.mxu0 %v1375_v19  ;;  %v1493_v19 = vld [vmem:[#allocation2 + $0x128] sm:$0xff] }
 0x511   :  { %2131 = vmatpush3.bf16.msra.mxu1 %v1331_v14  ;;  %2110 = vmatprep.subr.bf16.mxu0 %v1384_v1  ;;  %v1572_v14 = vld [vmem:[#allocation2 + $0x1a8] sm:$0xff]  ;;  %v1548_v1 = vrot.slane %v2986_v21, 3 }
 0x512   :  { %2132 = vmatprep.subr.bf16.mxu1 %v1340_v2  ;;  %v1549_v2 = vrot.slane %v2993_v32, 3 }
 0x514   :  { %2111 = vmatpush3.bf16.msra.mxu0 %v1376_v6  ;;  %v1556_v6 = vrot.slane %v3002_v46, 3  ;;  %v1550_v59 = vsel %vm1547_vm3, %v1548_v1, %v1549_v2  ;;  %v1660_v1 = vld [vmem:[#allocation2 + $0x270] sm:$0xff] }
 0x515   :  { %2133 = vmatpush3.bf16.msra.mxu1 %v1332_v29  ;;  %2112 = vmatprep.subr.bf16.mxu0 %v1385_v36  ;;  %v1557_v29 = vrot.slane %v3009_v58, 3  ;;  %v1471_v36 = vsel %vm1468_vm2, %v1469_v28, %v1470_v9  ;;  %v1650_v28 = vld [vmem:[#allocation2 + $0x220] sm:$0xff]  ;;  %v1738_v2 = vld [vmem:[#allocation2 + $0x2f0] sm:$0xff] }
 0x516   :  { %2134 = vmatprep.subr.bf16.mxu1 %v1341_v18  ;;  %v1479_v18 = vsel %vm1468_vm2, %v1477_v0, %v1478_v47  ;;  %v1728_v9 = vld [vmem:[#allocation2 + $0x2a0] sm:$0xff]  ;;  %v1651_v0 = vld [vmem:[#allocation2 + $0x228] sm:$0xff] }
 0x517   :  { %v1558_v16 = vsel %vm1547_vm3, %v1556_v6, %v1557_v29  ;;  %v1485_v26 = vpack.c.bf16 %v1479_v18, %v1471_v36  ;;  %v1729_v47 = vld [vmem:[#allocation2 + $0x2a8] sm:$0xff]  ;;  %v1635_v6 = vrot.slane %v3002_v46, 4  ;;  %v1636_v29 = vrot.slane %v3009_v58, 4 }
 0x518   :  { %2113 = vmatpush3.bf16.msra.mxu0 %v1377_v62  ;;  %v1708_v62 = vrot.slane %v2989_v8, 5  ;;  %v1564_v39 = vpack.c.bf16 %v1558_v16, %v1550_v59  ;;  %v1713_v36 = vrot.slane %v3002_v46, 5  ;;  %v1714_v18 = vrot.slane %v3009_v58, 5  ;;  %v1652_v59 = vld [vmem:[#allocation2 + $0x230] sm:$0xff] }
 0x519   :  { %2135 = vmatpush3.bf16.msra.mxu1 %v1333_v4  ;;  %2142 = vmatprep.subr.bf16.mxu0 %v1496_v43  ;;  %v1709_v4 = vrot.slane %v2996_v11, 5  ;;  %v1495_v43 = vld [vmem:[#allocation2 + $0x138] sm:$0xff]  ;;  %v1795_v16 = vrot.slane %v3005_v63, 6 }
 0x51a   :  { %2164 = vmatprep.subr.bf16.mxu1 %v1575_v50  ;;  %v1574_v50 = vld [vmem:[#allocation2 + $0x1b8] sm:$0xff] }
 0x51b   :  { %1419 = vmatmul.mubr.bf16.vlgmr.msra.gmra.mrb[0].mxu0 %v1367_v61  ;;  %v1716_v61 = vrot.slane %v3005_v63, 5 }
 0x51c   :  { %2088 = vmatmul.mubr.msk.bf16.vlgmr.msra.gmra.mrb[4].mxu1 %vm2081_vm1, %v2087_v20  ;;  %2143 = vmatpush3.bf16.msra.mxu0 %v1488_v7  ;;  %v1717_v20 = vrot.slane %v3012_v3, 5  ;;  %v1632_v7 = vsel %vm1626_vm4, %v1630_v57, %v1631_v33  ;;  %v1730_v57 = vld [vmem:[#allocation2 + $0x2b0] sm:$0xff]  ;;  %v1796_v33 = vrot.slane %v3012_v3, 6 }
 0x51d   :  { %2165 = vmatpush3.bf16.msra.mxu1 %v1567_v48  ;;  %2144 = vmatprep.subr.bf16.mxu0 %v1497_v35  ;;  %v1640_v48 = vsel %vm1626_vm4, %v1638_v30, %v1639_v54  ;;  %v1710_v35 = vsel %vm1160_vm14, %v1708_v62, %v1709_v4  ;;  %v1661_v30 = vld [vmem:[#allocation2 + $0x278] sm:$0xff]  ;;  %v1637_v4 = vsel %vm1626_vm4, %v1635_v6, %v1636_v29 }
 0x51e   :  { %2166 = vmatprep.subr.bf16.mxu1 %v1576_v37  ;;  %1536 = vmatprep.mubr.bf16.mxu0 %v1486_v24  ;;  %v1718_v37 = vsel %vm1160_vm14, %v1716_v61, %v1717_v20  ;;  %v1646_v24 = vld [vmem:[#allocation2 + $0x200] sm:$0xff]  ;;  %v1739_v54 = vld [vmem:[#allocation2 + $0x2f8] sm:$0xff]  ;;  %v1715_v20 = vsel %vm1160_vm14, %v1713_v36, %v1714_v18  ;;  %v1797_v3 = vsel %vm1783_vm5, %v1795_v16, %v1796_v33 }
 0x51f   :  { %1615 = vmatprep.mubr.bf16.mxu1 %v1565_v45  ;;  %v1724_v45 = vld [vmem:[#allocation2 + $0x280] sm:$0xff] }
 0x520   :  { %2145 = vmatpush3.bf16.msra.mxu0 %v1489_v15  ;;  %v1655_v15 = vld [vmem:[#allocation2 + $0x248] sm:$0xff] }
 0x521   :  { %2167 = vmatpush3.bf16.msra.mxu1 %v1568_v42  ;;  %2146 = vmatprep.subr.bf16.mxu0 %v1498_v34  ;;  %v1733_v42 = vld [vmem:[#allocation2 + $0x2c8] sm:$0xff]  ;;  %v1644_v34 = vpack.c.bf16 %v1640_v48, %v1632_v7  ;;  %v1813_v48 = vld [vmem:[#allocation2 + $0x350] sm:$0xff] }
 0x522   :  { %2168 = vmatprep.subr.bf16.mxu1 %v1577_v31  ;;  %v1722_v31 = vpack.c.bf16 %v1718_v37, %v1710_v35  ;;  %v1804_v7 = vld [vmem:[#allocation2 + $0x308] sm:$0xff]  ;;  %v1805_v35 = vld [vmem:[#allocation2 + $0x310] sm:$0xff]  ;;  %v1814_v37 = vld [vmem:[#allocation2 + $0x358] sm:$0xff] }
 0x524   :  { %2147 = vmatpush3.bf16.msra.mxu0 %v1490_v23  ;;  %v1647_v23 = vld [vmem:[#allocation2 + $0x208] sm:$0xff] }
 0x525   :  { %2169 = vmatpush3.bf16.msra.mxu1 %v1569_v40  ;;  %2148 = vmatprep.subr.bf16.mxu0 %v1499_v41  ;;  %v1725_v40 = vld [vmem:[#allocation2 + $0x288] sm:$0xff]  ;;  %v1656_v41 = vld [vmem:[#allocation2 + $0x250] sm:$0xff] }
 0x526   :  { %2170 = vmatprep.subr.bf16.mxu1 %v1578_v25  ;;  %v1734_v25 = vld [vmem:[#allocation2 + $0x2d0] sm:$0xff] }
 0x528   :  { %2149 = vmatpush3.bf16.msra.mxu0 %v1491_v49  ;;  %v1648_v49 = vld [vmem:[#allocation2 + $0x210] sm:$0xff] }
 0x529   :  { %2171 = vmatpush3.bf16.msra.mxu1 %v1570_v44  ;;  %2150 = vmatprep.subr.bf16.mxu0 %v1500_v55  ;;  %v1726_v44 = vld [vmem:[#allocation2 + $0x290] sm:$0xff]  ;;  %v1657_v55 = vld [vmem:[#allocation2 + $0x258] sm:$0xff] }
 0x52a   :  { %2172 = vmatprep.subr.bf16.mxu1 %v1579_v60  ;;  %v1735_v60 = vld [vmem:[#allocation2 + $0x2d8] sm:$0xff] }
 0x52c   :  { %2151 = vmatpush3.bf16.msra.mxu0 %v1492_v53  ;;  %v1649_v53 = vld [vmem:[#allocation2 + $0x218] sm:$0xff] }
 0x52d   :  { %2173 = vmatpush3.bf16.msra.mxu1 %v1571_v5  ;;  %2152 = vmatprep.subr.bf16.mxu0 %v1501_v27  ;;  %v1727_v5 = vld [vmem:[#allocation2 + $0x298] sm:$0xff]  ;;  %v1658_v27 = vld [vmem:[#allocation2 + $0x260] sm:$0xff] }
 0x52e   :  { %2174 = vmatprep.subr.bf16.mxu1 %v1580_v17  ;;  %v1736_v17 = vld [vmem:[#allocation2 + $0x2e0] sm:$0xff] }
 0x530   :  { %2153 = vmatpush3.bf16.msra.mxu0 %v1493_v19  ;;  %v1659_v19 = vld [vmem:[#allocation2 + $0x268] sm:$0xff] }
 0x531   :  { %2175 = vmatpush3.bf16.msra.mxu1 %v1572_v14  ;;  %2154 = vmatprep.subr.bf16.mxu0 %v1502_v13  ;;  %v1737_v14 = vld [vmem:[#allocation2 + $0x2e8] sm:$0xff]  ;;  %v1627_v13 = vrot.slane %v2986_v21, 4 }
 0x532   :  { %2176 = vmatprep.subr.bf16.mxu1 %v1581_v56  ;;  %v1628_v56 = vrot.slane %v2993_v32, 4 }
 0x534   :  { %2155 = vmatpush3.bf16.msra.mxu0 %v1494_v38  ;;  %v1705_v38 = vrot.slane %v2986_v21, 5  ;;  %v1629_v62 = vsel %vm1626_vm4, %v1627_v13, %v1628_v56 }
 0x535   :  { %2177 = vmatpush3.bf16.msra.mxu1 %v1573_v10  ;;  %2156 = vmatprep.subr.bf16.mxu0 %v1503_v52  ;;  %v1706_v10 = vrot.slane %v2993_v32, 5  ;;  %v1787_v52 = vrot.slane %v2989_v8, 6  ;;  %v1653_v8 = vld [vmem:[#allocation2 + $0x238] sm:$0xff] }
 0x536   :  { %2178 = vmatprep.subr.bf16.mxu1 %v1582_v51  ;;  %v1788_v51 = vrot.slane %v2996_v11, 6  ;;  %v1731_v11 = vld [vmem:[#allocation2 + $0x2b8] sm:$0xff] }
 0x537   :  { %v1707_v61 = vsel %vm1160_vm14, %v1705_v38, %v1706_v10 }
 0x538   :  { %2157 = vmatpush3.bf16.msra.mxu0 %v1495_v43  ;;  %v1789_v63 = vsel %vm1783_vm5, %v1787_v52, %v1788_v51  ;;  %v1811_v43 = vld [vmem:[#allocation2 + $0x340] sm:$0xff] }
 0x539   :  { %2179 = vmatpush3.bf16.msra.mxu1 %v1574_v50  ;;  %2186 = vmatprep.subr.bf16.mxu0 %v1654_v12  ;;  %v1643_v50 = vpack.c.bf16 %v1637_v4, %v1629_v62  ;;  %v1801_v12 = vpack.c.bf16 %v1797_v3, %v1789_v63 }
 0x53a   :  { %2208 = vmatprep.subr.bf16.mxu1 %v1732_v22  ;;  %v1812_v22 = vld [vmem:[#allocation2 + $0x348] sm:$0xff] }
 0x53b   :  { %1537 = vmatmul.mubr.bf16.vlgmr.msra.gmra.mrb[4].mxu0 %v1485_v26  ;;  %v1721_v26 = vpack.c.bf16 %v1715_v20, %v1707_v61 }
 0x53c   :  { %1616 = vmatmul.mubr.bf16.vlgmr.msra.gmra.mrb[8].mxu1 %v1564_v39  ;;  %2187 = vmatpush3.bf16.msra.mxu0 %v1646_v24  ;;  %v1803_v39 = vld [vmem:[#allocation2 + $0x300] sm:$0xff]  ;;  %v1806_v24 = vld [vmem:[#allocation2 + $0x318] sm:$0xff] }
 0x53d   :  { %2209 = vmatpush3.bf16.msra.mxu1 %v1724_v45  ;;  %2188 = vmatprep.subr.bf16.mxu0 %v1655_v15  ;;  %v1815_v45 = vld [vmem:[#allocation2 + $0x360] sm:$0xff] }
 0x53e   :  { %2210 = vmatprep.subr.bf16.mxu1 %v1733_v42  ;;  %1694 = vmatprep.mubr.bf16.mxu0 %v1644_v34  ;;  %v1807_v15 = vld [vmem:[#allocation2 + $0x320] sm:$0xff]  ;;  %v1816_v42 = vld [vmem:[#allocation2 + $0x368] sm:$0xff] }
 0x53f   :  { %1772 = vmatprep.mubr.bf16.mxu1 %v1722_v31  ;;  %v1808_v34 = vld [vmem:[#allocation2 + $0x328] sm:$0xff]  ;;  %v1817_v31 = vld [vmem:[#allocation2 + $0x370] sm:$0xff] }
 0x540   :  { %2189 = vmatpush3.bf16.msra.mxu0 %v1647_v23  ;;  %v1784_v23 = vrot.slane %v2986_v21, 6 }
 0x541   :  { %2211 = vmatpush3.bf16.msra.mxu1 %v1725_v40  ;;  %2190 = vmatprep.subr.bf16.mxu0 %v1656_v41  ;;  %v1785_v40 = vrot.slane %v2993_v32, 6  ;;  %v1792_v41 = vrot.slane %v3002_v46, 6 }
 0x542   :  { %2212 = vmatprep.subr.bf16.mxu1 %v1734_v25  ;;  %v1793_v25 = vrot.slane %v3009_v58, 6 }
 0x544   :  { %2191 = vmatpush3.bf16.msra.mxu0 %v1648_v49  ;;  %v1809_v49 = vld [vmem:[#allocation2 + $0x330] sm:$0xff] }
 0x545   :  { %2213 = vmatpush3.bf16.msra.mxu1 %v1726_v44  ;;  %2192 = vmatprep.subr.bf16.mxu0 %v1657_v55  ;;  %v1818_v44 = vld [vmem:[#allocation2 + $0x378] sm:$0xff]  ;;  %v1786_v55 = vsel %vm1783_vm5, %v1784_v23, %v1785_v40 }
 0x546   :  { %2214 = vmatprep.subr.bf16.mxu1 %v1735_v60  ;;  %v1794_v60 = vsel %vm1783_vm5, %v1792_v41, %v1793_v25 }
 0x548   :  { %2193 = vmatpush3.bf16.msra.mxu0 %v1649_v53  ;;  %v1810_v53 = vld [vmem:[#allocation2 + $0x338] sm:$0xff] }
 0x549   :  { %2215 = vmatpush3.bf16.msra.mxu1 %v1727_v5  ;;  %2194 = vmatprep.subr.bf16.mxu0 %v1658_v27  ;;  %v1800_v5 = vpack.c.bf16 %v1794_v60, %v1786_v55 }
 0x54a   :  { %2216 = vmatprep.subr.bf16.mxu1 %v1736_v17 }
 0x54c   :  { %2195 = vmatpush3.bf16.msra.mxu0 %v1650_v28 }
 0x54d   :  { %2217 = vmatpush3.bf16.msra.mxu1 %v1728_v9  ;;  %2196 = vmatprep.subr.bf16.mxu0 %v1659_v19 }
 0x54e   :  { %2218 = vmatprep.subr.bf16.mxu1 %v1737_v14 }
 0x550   :  { %2197 = vmatpush3.bf16.msra.mxu0 %v1651_v0 }
 0x551   :  { %2219 = vmatpush3.bf16.msra.mxu1 %v1729_v47  ;;  %2198 = vmatprep.subr.bf16.mxu0 %v1660_v1 }
 0x552   :  { %2220 = vmatprep.subr.bf16.mxu1 %v1738_v2 }
 0x554   :  { %2199 = vmatpush3.bf16.msra.mxu0 %v1652_v59 }
 0x555   :  { %2221 = vmatpush3.bf16.msra.mxu1 %v1730_v57  ;;  %2200 = vmatprep.subr.bf16.mxu0 %v1661_v30 }
 0x556   :  { %2222 = vmatprep.subr.bf16.mxu1 %v1739_v54 }
 0x558   :  { %2201 = vmatpush3.bf16.msra.mxu0 %v1653_v8 }
 0x559   :  { %2223 = vmatpush3.bf16.msra.mxu1 %v1731_v11  ;;  %2230 = vmatprep.subr.bf16.mxu0 %v1811_v43 }
 0x55b   :  { %1695 = vmatmul.mubr.bf16.vlgmr.msra.gmra.mrb[8].mxu0 %v1643_v50 }
 0x55c   :  { %1773 = vmatmul.mubr.bf16.vlgmr.msra.gmra.mrb[12].mxu1 %v1721_v26  ;;  %2231 = vmatpush3.bf16.msra.mxu0 %v1803_v39 }
 0x55d   :  { %1851 = vmatprep.mubr.bf16.mxu0 %v1801_v12  ;;  %2232 = vmatprep.subr.bf16.mxu0 %v1812_v22 }
 0x560   :  { %2233 = vmatpush3.bf16.msra.mxu0 %v1804_v7 }
 0x561   :  { %2234 = vmatprep.subr.bf16.mxu0 %v1813_v48 }
 0x564   :  { %2235 = vmatpush3.bf16.msra.mxu0 %v1805_v35 }
 0x565   :  { %2236 = vmatprep.subr.bf16.mxu0 %v1814_v37 }
 0x568   :  { %2237 = vmatpush3.bf16.msra.mxu0 %v1806_v24 }
 0x569   :  { %2238 = vmatprep.subr.bf16.mxu0 %v1815_v45 }
 0x56c   :  { %2239 = vmatpush3.bf16.msra.mxu0 %v1807_v15 }
 0x56d   :  { %2240 = vmatprep.subr.bf16.mxu0 %v1816_v42  ;;  %v1862_v42 = vstv %s2783_s2 }
 0x570   :  { %2241 = vmatpush3.bf16.msra.mxu0 %v1808_v34 }
 0x571   :  { %2242 = vmatprep.subr.bf16.mxu0 %v1817_v31 }
 0x574   :  { %2243 = vmatpush3.bf16.msra.mxu0 %v1809_v49 }
 0x575   :  { %2244 = vmatprep.subr.bf16.mxu0 %v1818_v44 }
 0x578   :  { %2245 = vmatpush3.bf16.msra.mxu0 %v1810_v53 }
 0x57b   :  { %1852 = vmatmul.mubr.bf16.vlgmr.msra.gmra.mrb[12].mxu0 %v1800_v5 }
 0x5ee   :  { %v2114_v21 = vpop.f32.mrb[0].mxu0 }
 0x5ef   :  { %v2136_v27 = vpop.f32.mrb[4].mxu1  ;;  %v2115_v32 = vpop.f32.mrb[1].mxu0 }
 0x5f0   :  { %v2137_v17 = vpop.f32.mrb[5].mxu1  ;;  %v2116_v46 = vadd.f32 %v2115_v32, %v2114_v21  ;;  %v2117_v58 = vpop.f32.mrb[2].mxu0 }
 0x5f1   :  { %v2138_v28 = vadd.f32 %v2137_v17, %v2136_v27  ;;  %v2139_v9 = vpop.f32.mrb[6].mxu1  ;;  %v2118_v19 = vpop.f32.mrb[3].mxu0 }
 0x5f2   :  { %v2140_v14 = vpop.f32.mrb[7].mxu1  ;;  %v2119_v47 = vadd.f32 %v2118_v19, %v2117_v58 }
 0x5f3   :  { %v1462_v0 = vadd.f32 %v2138_v28, %v2116_v46  ;;  %v2141_v1 = vadd.f32 %v2140_v14, %v2139_v9 }
 0x5f5   :  { %v1465_v2 = vadd.f32 %v2141_v1, %v2119_v47 }
 0x60e   :  { %v2158_v13 = vpop.f32.mrb[4].mxu0 }
 0x60f   :  { %v2180_v56 = vpop.f32.mrb[8].mxu1  ;;  %v2159_v6 = vpop.f32.mrb[5].mxu0 }
 0x610   :  { %v2181_v29 = vpop.f32.mrb[9].mxu1  ;;  %v2160_v38 = vadd.f32 %v2159_v6, %v2158_v13  ;;  %v2161_v10 = vpop.f32.mrb[6].mxu0 }
 0x611   :  { %v2182_v36 = vadd.f32 %v2181_v29, %v2180_v56  ;;  %v2183_v18 = vpop.f32.mrb[10].mxu1  ;;  %v2162_v59 = vpop.f32.mrb[7].mxu0 }
 0x612   :  { %v2184_v57 = vpop.f32.mrb[11].mxu1  ;;  %v1545_v52 = vadd.f32 %v2160_v38, %v1462_v0  ;;  %v2163_v51 = vadd.f32 %v2162_v59, %v2161_v10  ;;  %v1900_v59 = vstv %s2787_s8 }
 0x613   :  { %v2185_v16 = vadd.f32 %v2184_v57, %v2183_v18 }
 0x614   :  { %v1546_v33 = vadd.f32 %v2163_v51, %v1465_v2  ;;  %v1624_v30 = vadd.f32 %v2182_v36, %v1545_v52  ;;  %v1898_v36 = vstv %s2785_s7  ;;  %s2435_s7 = smov [#allocation9]  }
 0x615   :  { %s2054_s8 = sshll.u32 %s2435_s7, 4  ;;  %s2055_s8 = int_to_ptr.vmem [resolvable:$true] %s2054_s8 }
 0x616   :  { %v1625_v54 = vadd.f32 %v2185_v16, %v1546_v33  ;;  %s2396_s20 = scalar_lea.vmem %s2055_s8, 4096  ;;  %p2401_p8 = scmp.lt.s32.totalorder %s2055_s8, %s2055_s8 }
 0x617   :  { %p2397_p7 = scmp.ne.s32.totalorder %s2055_s8, %s2396_s20  ;;  %p2402_p9 = scmp.lt.s32.totalorder %s2396_s20, %s2396_s20 }
 0x619   :  { %p2403_p10 = por %p2402_p9, %p2401_p8 }
 0x61b   :  { %p2404_p11 = pnand %p2403_p10, %p2397_p7 }
 0x62e   :  { %v2202_v62 = vpop.f32.mrb[8].mxu0 }
 0x62f   :  { %v2224_v4 = vpop.f32.mrb[12].mxu1  ;;  %v2203_v61 = vpop.f32.mrb[9].mxu0 }
 0x630   :  { %v2225_v20 = vpop.f32.mrb[13].mxu1  ;;  %v2204_v8 = vadd.f32 %v2203_v61, %v2202_v62  ;;  %v2205_v11 = vpop.f32.mrb[10].mxu0 }
 0x631   :  { %v2226_v63 = vadd.f32 %v2225_v20, %v2224_v4  ;;  %v2227_v3 = vpop.f32.mrb[14].mxu1  ;;  %v2206_v43 = vpop.f32.mrb[11].mxu0 }
 0x632   :  { %v2228_v50 = vpop.f32.mrb[15].mxu1  ;;  %v1703_v26 = vadd.f32 %v2204_v8, %v1624_v30  ;;  %v2207_v12 = vadd.f32 %v2206_v43, %v2205_v11  ;;  %v1910_v8 = vld [vmem:[#allocation9] sm:$0xff]  ;;  %v1911_v11 = vld [vmem:[#allocation9 + $0x8] sm:$0xff] }
 0x633   :  { %v2229_v39 = vadd.f32 %v2228_v50, %v2227_v3  ;;  %v1913_v3 = vld [vmem:[#allocation9 + $0x18] sm:$0xff]  ;;  %v1914_v43 = vld [vmem:[#allocation9 + $0x20] sm:$0xff]  ;;  %v1915_v50 = vld [vmem:[#allocation9 + $0x28] sm:$0xff] }
 0x634   :  { %v1704_v22 = vadd.f32 %v2207_v12, %v1625_v54  ;;  %v1781_v7 = vadd.f32 %v2226_v63, %v1703_v26  ;;  %v1912_v63 = vld [vmem:[#allocation9 + $0x10] sm:$0xff]  ;;  %v1917_v12 = vld [vmem:[#allocation9 + $0x38] sm:$0xff] }
 0x635   :  { %v1916_v26 = vld [vmem:[#allocation9 + $0x30] sm:$0xff] }
 0x636   :  { %v1782_v48 = vadd.f32 %v2229_v39, %v1704_v22  ;;  %v1918_v39 = vld [vmem:[#allocation9 + $0x40] sm:$0xff]  ;;  %v1919_v22 = vld [vmem:[#allocation9 + $0x48] sm:$0xff] }
 0x64e   :  { %v2246_v35 = vpop.f32.mrb[12].mxu0 }
 0x64f   :  { %v2247_v37 = vpop.f32.mrb[13].mxu0 }
 0x650   :  { %v2248_v24 = vadd.f32 %v2247_v37, %v2246_v35  ;;  %v2249_v45 = vpop.f32.mrb[14].mxu0  ;;  %v1921_v35 = vld [vmem:[#allocation9 + $0x58] sm:$0xff]  ;;  %v1922_v37 = vld [vmem:[#allocation9 + $0x60] sm:$0xff] }
 0x651   :  { %v2250_v15 = vpop.f32.mrb[15].mxu0 }
 0x652   :  { %v1860_v34 = vadd.f32 %v2248_v24, %v1781_v7  ;;  %v2251_v31 = vadd.f32 %v2250_v15, %v2249_v45  ;;  %v1923_v24 = vld [vmem:[#allocation9 + $0x68] sm:$0xff]  ;;  %v1924_v45 = vld [vmem:[#allocation9 + $0x70] sm:$0xff]  ;;  %v1925_v15 = vld [vmem:[#allocation9 + $0x78] sm:$0xff] }
 0x654   :  { %v1861_v23 = vadd.f32 %v2251_v31, %v1782_v48  ;;  %v1863_v40 = vadd.f32 %v1862_v42, %v1860_v34  ;;  %v1920_v48 = vld [vmem:[#allocation9 + $0x50] sm:$0xff] }
 0x656   :  { %1865 = vadd.xlane.f32.xlu0 %v1863_v40  ;;  %v1864_v41 = vadd.f32 %v1862_v42, %v1861_v23 }
 0x658   :  { %1958 = vadd.xlane.f32.xlu1 %v1864_v41 }
 0x6e3   :  { %v1866_v25 = vpop.xlane.xlu0 %1865 }
 0x6e4   :  { %v1867_v49 = vrot.slane %v1866_v25, 4 }
 0x6e5   :  { %v1959_v0 = vpop.xlane.xlu1 %1958 }
 0x6e6   :  { %v1868_v44 = vadd.f32 %v1867_v49, %v1866_v25  ;;  %v1960_v47 = vrot.slane %v1959_v0, 4 }
 0x6e8   :  { %v1869_v55 = vrot.slane %v1868_v44, 2  ;;  %v1961_v1 = vadd.f32 %v1960_v47, %v1959_v0 }
 0x6ea   :  { %v1870_v60 = vadd.f32 %v1869_v55, %v1868_v44  ;;  %v1962_v2 = vrot.slane %v1961_v1, 2 }
 0x6ec   :  { %v1871_v53 = vrot.slane %v1870_v60, 1  ;;  %v1963_v56 = vadd.f32 %v1962_v2, %v1961_v1 }
 0x6ee   :  { %v1872_v5 = vadd.f32 %v1871_v53, %v1870_v60  ;;  %v1964_v6 = vrot.slane %v1963_v56, 1 }
 0x6f0   :  { %2274 = vpush %v1872_v5  ;;  %v1965_v38 = vadd.f32 %v1964_v6, %v1963_v56 }
 0x721   :  { %s2275_s3 = spop %2274 }
 0x722   :  { %s1876_s10 = smul.f32 0.0009765625, %s2275_s3 }
 0x724   :  { %v1877_v21 = vstv %s1876_s10 }
 0x725   :  { %v1878_v27 = vsub.f32 %v1863_v40, %v1877_v21 }
 0x727   :  { %v1879_v32 = vmul.f32 %v1878_v27, %v1878_v27 }
 0x729   :  { %1880 = vadd.xlane.f32.xlu0 %v1879_v32 }
 0x7b6   :  { %v1881_v17 = vpop.xlane.xlu0 %1880 }
 0x7b7   :  { %v1882_v46 = vrot.slane %v1881_v17, 4 }
 0x7b9   :  { %v1883_v28 = vadd.f32 %v1882_v46, %v1881_v17 }
 0x7bb   :  { %v1884_v58 = vrot.slane %v1883_v28, 2 }
 0x7bd   :  { %v1885_v9 = vadd.f32 %v1884_v58, %v1883_v28 }
 0x7bf   :  { %v1886_v19 = vrot.slane %v1885_v9, 1 }
 0x7c1   :  { %v1887_v14 = vadd.f32 %v1886_v19, %v1885_v9 }
 0x7c3   :  { %2276 = vpush %v1887_v14 }
 0x7f4   :  { %s2277_s2 = spop %2276 }
 0x7f5   :  { %s1891_s11 = smul.f32 0.0009765625, %s2277_s2 }
 0x7f7   :  { %s1892_s12 = sadd.f32 1e-05, %s1891_s11 }
 0x7f9   :  { %v1893_v13 = vstv %s1892_s12 }
 0x7fa   :  { %2328 = vrsqrt.f32 %v1893_v13 }
 0x804   :  { %v2329_v29 = vpop.eup %2328 }
 0x805   :  { %2278 = vpush %v2329_v29 }
 0x806   :  { %2280 = vpush %v1965_v38 }
 0x836   :  { %s2279_s13 = spop %2278 }
 0x837   :  { %v1896_v10 = vstv %s2279_s13  ;;  %s2281_s14 = spop %2280 }
 0x838   :  { %v1897_v18 = vmul.f32 %v1896_v10, %v1878_v27  ;;  %s1969_s15 = smul.f32 0.0009765625, %s2281_s14 }
 0x83a   :  { %v1899_v57 = vmul.f32 %v1898_v36, %v1897_v18  ;;  %v1970_v52 = vstv %s1969_s15 }
 0x83b   :  { %v3111_v51 = vsub.f32 %v1864_v41, %v1970_v52  ;;  %v2001_v52 = vld [vmem:[#allocation9 + $0x80] sm:$0xff] }
 0x83c   :  { %v1901_v16 = vadd.f32 %v1900_v59, %v1899_v57 }
 0x83d   :  { %v1972_v33 = vmul.f32 %v3111_v51, %v3111_v51 }
 0x83e   :  { %vm1902_vm6 = vcmp.ge.f32.partialorder %v1901_v16, 0.0  ;;  %v1903_v30 = vmul.f32 0.01, %v1901_v16 }
 0x83f   :  { %1973 = vadd.xlane.f32.xlu1 %v1972_v33  ;;  %v2003_v33 = vld [vmem:[#allocation9 + $0x90] sm:$0xff] }
 0x840   :  { %v1904_v54 = vsel %vm1902_vm6, %v1901_v16, %v1903_v30  ;;  %v2002_v16 = vld [vmem:[#allocation9 + $0x88] sm:$0xff]  ;;  %v2004_v30 = vld [vmem:[#allocation9 + $0x98] sm:$0xff] }
 0x841   :  { %v1905_v62 = vsub.f32 0.0, %v1904_v54  ;;  %v2005_v54 = vld [vmem:[#allocation9 + $0xa0] sm:$0xff] }
 0x843   :  { %v1906_v4 = vmul.f32 1.442695, %v1905_v62  ;;  %v2006_v62 = vld [vmem:[#allocation9 + $0xa8] sm:$0xff] }
 0x845   :  { %2330 = vpow2.f32 %v1906_v4  ;;  %v2008_v4 = vld [vmem:[#allocation9 + $0xb8] sm:$0xff] }
 0x84f   :  { %v2331_v61 = vpop.eup %2330 }
 0x850   :  { %v1908_v20 = vadd.f32 1.0, %v2331_v61  ;;  %v2010_v61 = vld [vmem:[#allocation9 + $0xc8] sm:$0xff] }
 0x852   :  { %2332 = vrcp.f32 %v1908_v20  ;;  %v2011_v20 = vld [vmem:[#allocation9 + $0xd0] sm:$0xff] }
 0x85c   :  { %v2333_v7 = vpop.eup %2332 }
 0x85d   :  { %v1926_v42 = vmul.f32 %v2333_v7, %v1910_v8  ;;  %v1927_v34 = vmul.f32 %v2333_v7, %v1911_v11  ;;  %v1928_v31 = vmul.f32 %v2333_v7, %v1912_v63  ;;  %v1929_v23 = vmul.f32 %v2333_v7, %v1913_v3  ;;  %v2012_v8 = vld [vmem:[#allocation9 + $0xd8] sm:$0xff]  ;;  %v2013_v11 = vld [vmem:[#allocation9 + $0xe0] sm:$0xff]  ;;  %v2014_v63 = vld [vmem:[#allocation9 + $0xe8] sm:$0xff] }
 0x85e   :  { %v1930_v40 = vmul.f32 %v2333_v7, %v1914_v43  ;;  %v1931_v41 = vmul.f32 %v2333_v7, %v1915_v50  ;;  %v1932_v25 = vmul.f32 %v2333_v7, %v1916_v26  ;;  %v1933_v49 = vmul.f32 %v2333_v7, %v1917_v12  ;;  %v2015_v3 = vld [vmem:[#allocation9 + $0xf0] sm:$0xff]  ;;  %v2016_v43 = vld [vmem:[#allocation9 + $0xf8] sm:$0xff] }
 0x85f   :  { %v1934_v44 = vmul.f32 %v2333_v7, %v1918_v39  ;;  %v1935_v55 = vmul.f32 %v2333_v7, %v1919_v22  ;;  %v1936_v60 = vmul.f32 %v2333_v7, %v1920_v48  ;;  %v1937_v53 = vmul.f32 %v2333_v7, %v1921_v35  ;;  %1942 = vst [vmem:[#allocation9] sm:$0xff] %v1926_v42 }
 0x860   :  { %1943 = vst [vmem:[#allocation9 + $0x8] sm:$0xff] %v1927_v34  ;;  %1944 = vst [vmem:[#allocation9 + $0x10] sm:$0xff] %v1928_v31  ;;  %v1938_v5 = vmul.f32 %v2333_v7, %v1922_v37  ;;  %v1939_v21 = vmul.f32 %v2333_v7, %v1923_v24  ;;  %v1940_v27 = vmul.f32 %v2333_v7, %v1924_v45 }
 0x861   :  { %1945 = vst [vmem:[#allocation9 + $0x18] sm:$0xff] %v1929_v23  ;;  %v1941_v32 = vmul.f32 %v2333_v7, %v1925_v15  ;;  %1946 = vst [vmem:[#allocation9 + $0x20] sm:$0xff] %v1930_v40 }
 0x862   :  { %1947 = vst [vmem:[#allocation9 + $0x28] sm:$0xff] %v1931_v41  ;;  %1948 = vst [vmem:[#allocation9 + $0x30] sm:$0xff] %v1932_v25 }
 0x863   :  { %1949 = vst [vmem:[#allocation9 + $0x38] sm:$0xff] %v1933_v49  ;;  %1950 = vst [vmem:[#allocation9 + $0x40] sm:$0xff] %v1934_v44 }
 0x864   :  { %1951 = vst [vmem:[#allocation9 + $0x48] sm:$0xff] %v1935_v55  ;;  %1952 = vst [vmem:[#allocation9 + $0x50] sm:$0xff] %v1936_v60 }
 0x865   :  { %1953 = vst [vmem:[#allocation9 + $0x58] sm:$0xff] %v1937_v53  ;;  %1954 = vst [vmem:[#allocation9 + $0x60] sm:$0xff] %v1938_v5 }
 0x866   :  { %1955 = vst [vmem:[#allocation9 + $0x68] sm:$0xff] %v1939_v21  ;;  %1956 = vst [vmem:[#allocation9 + $0x70] sm:$0xff] %v1940_v27 }
 0x867   :  { %1957 = vst [vmem:[#allocation9 + $0x78] sm:$0xff] %v1941_v32 }
 0x8cc   :  { %v1974_v17 = vpop.xlane.xlu1 %1973 }
 0x8cd   :  { %v1975_v46 = vrot.slane %v1974_v17, 4 }
 0x8cf   :  { %v1976_v28 = vadd.f32 %v1975_v46, %v1974_v17 }
 0x8d1   :  { %v1977_v58 = vrot.slane %v1976_v28, 2 }
 0x8d3   :  { %v1978_v9 = vadd.f32 %v1977_v58, %v1976_v28 }
 0x8d5   :  { %v1979_v19 = vrot.slane %v1978_v9, 1 }
 0x8d7   :  { %v1980_v14 = vadd.f32 %v1979_v19, %v1978_v9 }
 0x8d9   :  { %2282 = vpush %v1980_v14 }
 0x90a   :  { %s2283_s16 = spop %2282 }
 0x90b   :  { %s1984_s17 = smul.f32 0.0009765625, %s2283_s16 }
 0x90d   :  { %s1985_s18 = sadd.f32 1e-05, %s1984_s17 }
 0x90f   :  { %v1986_v0 = vstv %s1985_s18 }
 0x910   :  { %2334 = vrsqrt.f32 %v1986_v0 }
 0x91a   :  { %v2335_v47 = vpop.eup %2334 }
 0x91b   :  { %2284 = vpush %v2335_v47 }
 0x94c   :  { %s2285_s19 = spop %2284 }
 0x94d   :  { %v1989_v1 = vstv %s2285_s19 }
 0x94e   :  { %v1990_v2 = vmul.f32 %v1989_v1, %v3111_v51  ;;  %v2007_v51 = vld [vmem:[#allocation9 + $0xb0] sm:$0xff] }
 0x950   :  { %v1991_v13 = vmul.f32 %v1990_v2, %v1898_v36  ;;  %v2009_v36 = vld [vmem:[#allocation9 + $0xc0] sm:$0xff] }
 0x952   :  { %v1992_v56 = vadd.f32 %v1991_v13, %v1900_v59 }
 0x954   :  { %vm1993_vm7 = vcmp.ge.f32.partialorder %v1992_v56, 0.0  ;;  %v1994_v6 = vmul.f32 0.01, %v1992_v56 }
 0x956   :  { %v1995_v29 = vsel %vm1993_vm7, %v1992_v56, %v1994_v6 }
 0x957   :  { %v1996_v38 = vsub.f32 0.0, %v1995_v29 }
 0x959   :  { %v1997_v10 = vmul.f32 1.442695, %v1996_v38 }
 0x95b   :  { %2336 = vpow2.f32 %v1997_v10 }
 0x965   :  { %v2337_v18 = vpop.eup %2336 }
 0x966   :  { %v1999_v57 = vadd.f32 1.0, %v2337_v18 }
 0x968   :  { %2338 = vrcp.f32 %v1999_v57 }
 0x972   :  { %v2339_v59 = vpop.eup %2338 }
 0x973   :  { %v2017_v50 = vmul.f32 %v2339_v59, %v2001_v52  ;;  %v2018_v26 = vmul.f32 %v2339_v59, %v2002_v16  ;;  %v2019_v12 = vmul.f32 %v2339_v59, %v2003_v33  ;;  %v2020_v39 = vmul.f32 %v2339_v59, %v2004_v30 }
 0x974   :  { %v2021_v22 = vmul.f32 %v2339_v59, %v2005_v54  ;;  %v2022_v7 = vmul.f32 %v2339_v59, %v2006_v62  ;;  %v2023_v48 = vmul.f32 %v2339_v59, %v2007_v51  ;;  %v2024_v35 = vmul.f32 %v2339_v59, %v2008_v4 }
 0x975   :  { %v2025_v37 = vmul.f32 %v2339_v59, %v2009_v36  ;;  %v2026_v24 = vmul.f32 %v2339_v59, %v2010_v61  ;;  %v2027_v45 = vmul.f32 %v2339_v59, %v2011_v20  ;;  %v2028_v15 = vmul.f32 %v2339_v59, %v2012_v8  ;;  %2033 = vst [vmem:[#allocation9 + $0x80] sm:$0xff] %v2017_v50 }
 0x976   :  { %2034 = vst [vmem:[#allocation9 + $0x88] sm:$0xff] %v2018_v26  ;;  %2035 = vst [vmem:[#allocation9 + $0x90] sm:$0xff] %v2019_v12  ;;  %v2029_v42 = vmul.f32 %v2339_v59, %v2013_v11  ;;  %v2030_v34 = vmul.f32 %v2339_v59, %v2014_v63  ;;  %v2031_v31 = vmul.f32 %v2339_v59, %v2015_v3 }
 0x977   :  { %2036 = vst [vmem:[#allocation9 + $0x98] sm:$0xff] %v2020_v39  ;;  %v2032_v23 = vmul.f32 %v2339_v59, %v2016_v43  ;;  %2037 = vst [vmem:[#allocation9 + $0xa0] sm:$0xff] %v2021_v22 }
 0x978   :  { %2038 = vst [vmem:[#allocation9 + $0xa8] sm:$0xff] %v2022_v7  ;;  %2039 = vst [vmem:[#allocation9 + $0xb0] sm:$0xff] %v2023_v48 }
 0x979   :  { %2040 = vst [vmem:[#allocation9 + $0xb8] sm:$0xff] %v2024_v35  ;;  %2041 = vst [vmem:[#allocation9 + $0xc0] sm:$0xff] %v2025_v37 }
 0x97a   :  { %2042 = vst [vmem:[#allocation9 + $0xc8] sm:$0xff] %v2026_v24  ;;  %2043 = vst [vmem:[#allocation9 + $0xd0] sm:$0xff] %v2027_v45 }
 0x97b   :  { %2044 = vst [vmem:[#allocation9 + $0xd8] sm:$0xff] %v2028_v15  ;;  %2045 = vst [vmem:[#allocation9 + $0xe0] sm:$0xff] %v2029_v42 }
 0x97c   :  { %2046 = vst [vmem:[#allocation9 + $0xe8] sm:$0xff] %v2030_v34  ;;  %2047 = vst [vmem:[#allocation9 + $0xf0] sm:$0xff] %v2031_v31 }
 0x97d   :  { %2048 = vst [vmem:[#allocation9 + $0xf8] sm:$0xff] %v2032_v23 }
 0x97e   :  { %2407 = shalt.err (!%p2404_p11)
}
 0x97f   :  { %s2408_s22 = scalar_lea.hbm %s3141_s4, 4096 }
 0x980   :  { %p2409_p12 = scmp.ne.s32.totalorder %s3141_s4, %s2408_s22  ;;  %p2412_p13 = scmp.lt.u32.totalorder %s2408_s22, %s3141_s4 }
 0x982   :  { %p2414_p0 = pnand %p2412_p13, %p2409_p12 }
 0x984   :  { %2417 = shalt.err (!%p2414_p0)
}
 0x985   :  { %2060 = dma.vmem_to_hbm [thread:$0]  %s2055_s8, 4096, %s3141_s4, [#allocation6], %s2428_s29, %s2428_s29, %s2429_s30  }
 0x986   :  { %2424 = dma.done.wait [#allocation6], 4096  }
 0x987   :  { %2425 = vsyncadd [#allocation6], 4294963200 }
 0x988   :  { %2064 = vsyncpa [#allocation5], 1 }
 0x989   :  { %2065 = vsyncpa [#allocation6], 1 }
 0x98a   :  { %2066 = vsyncpa [#allocation7], 1 }
 0x98b   :  { %2067 = vsyncmov [#allocation3] }
 0x98e   :  { %s2068_s28 = vpop.sfrf %2067 }
 0x98f   :  { %p2089_p1 = scmp.ne.s32.totalorder %s2068_s28, 0 }
 0x991   :  { %2072 = shalt.err (%p2089_p1)  }

</bundles_post_ra>
